<compile_context>
chip_gen: v6e
topology: v6e:2x2x1
jax: 0.10.0
libtpu: 0.0.40
codegen_flags: <defaults>
</compile_context>

<pallas_src>
import functools

import jax
import jax.numpy as jnp
from jax import lax
from jax.experimental import pallas as pl
from jax.experimental.pallas import tpu as pltpu


def _basic_block_kernel(x_ref, w1c_ref, s1c_ref, b1c_ref,
                        w2_ref, s2_ref, b2_ref, o_ref,
                        *, H, W, NB, Cmid):
    """Fused BasicBlock for NB images, lane-flat (C, NB*H*W) activations.

    x_ref   : (NB, CP, H*W)             input, channels zero-padded to CP
    w1c_ref : (9, Cmid+Cout, CP)  bf16  conv1 weight + 1x1 shortcut rows
    w2_ref  : (9, Cout, Cmid)     bf16  conv2 weight
    s*/b*   : (rows, 1)           f32   folded BN scale / bias
    o_ref   : (NB, Cout, H*W)           NCHW-flattened output
    """
    HW = H * W
    L = NB * HW

    # ---- lane-flat input: batch folded into the lane axis (aligned concat) --
    if NB == 1:
        xf = x_ref[0].astype(jnp.float32)                          # (CP, HW)
    else:
        xf = jnp.concatenate([x_ref[i] for i in range(NB)],
                             axis=1).astype(jnp.float32)           # (CP, L)

    # ---- stencil boundary masks: iota + bit ops (H, W are powers of two) ----
    lane = lax.broadcasted_iota(jnp.int32, (1, L), 1)
    p_img = jnp.bitwise_and(lane, HW - 1)    # flat position inside its image
    w_img = jnp.bitwise_and(lane, W - 1)     # column inside its image row

    def tap_mask(dh, dw):
        conds = []
        if dh == -1:
            conds.append(p_img >= W)
        elif dh == 1:
            conds.append(p_img < (H - 1) * W)
        if dw == -1:
            conds.append(w_img >= 1)
        elif dw == 1:
            conds.append(w_img < W - 1)
        if not conds:
            return None
        m = conds[0]
        for c in conds[1:]:
            m = jnp.logical_and(m, c)
        return m

    taps9 = [(kh - 1, kw - 1) for kh in range(3) for kw in range(3)]
    masks = [tap_mask(dh, dw) for dh, dw in taps9]

    def conv3x3(act, w_ref):
        """act: (C, L) f32, w_ref: (9, R, C) bf16 -> (R, L) f32 accumulator."""
        acc = None
        for t, (dh, dw) in enumerate(taps9):
            off = dh * W + dw
            tap = act if off == 0 else pltpu.roll(act, (-off) % L, axis=1)
            if masks[t] is not None:
                tap = jnp.where(masks[t], tap, 0.0)
            d = jnp.dot(w_ref[t], tap.astype(jnp.bfloat16),
                        preferred_element_type=jnp.float32)
            acc = d if acc is None else acc + d
        return acc

    # ---- conv1 (3x3) + fused 1x1 shortcut + folded BN ------------------------
    ysc = conv3x3(xf, w1c_ref) * s1c_ref[...] + b1c_ref[...]   # (Cmid+Cout, L)
    y = jnp.maximum(ysc[:Cmid], 0.0)                           # conv1+BN+ReLU
    sc = ysc[Cmid:]                                            # shortcut+BN

    # ---- conv2 (3x3) + BN + residual add + ReLU ------------------------------
    z = conv3x3(y, w2_ref) * s2_ref[...] + b2_ref[...] + sc
    z = jnp.maximum(z, 0.0)                                    # (Cout, L)

    # ---- lane-dense stores: one aligned 256-lane slab per image --------------
    for i in range(NB):
        o_ref[i] = z[:, i * HW:(i + 1) * HW].astype(o_ref.dtype)


def _round_up(n, m):
    return ((n + m - 1) // m) * m


def basic_block_forward(x_nchw, p, images_per_step=None):
    """BasicBlock.forward with lbda=None, perm=None, args.leaky=False, stride=1."""
    N, Cin, H, W = x_nchw.shape
    KH, KW, _, Cmid = p["w1"].shape
    Cout = p["w2"].shape[-1]
    HW = H * W
    assert KH == 3 and KW == 3, "BasicBlock uses 3x3 convolutions"
    assert (H & (H - 1)) == 0 and (W & (W - 1)) == 0, (
        "power-of-two H, W assumed for the in-kernel bitmask stencil masks")

    CP = _round_up(Cin, 8)  # sublane-align conv1 tap blocks (zero channels)

    if images_per_step is None:
        images_per_step = 1
        while (N % (images_per_step * 2) == 0
               and (images_per_step * 2) * HW <= 2048):
            images_per_step *= 2
    NB = images_per_step
    assert N % NB == 0, (N, NB)

    # --- weights in tap-major (kh, kw) x (out, in) layout, bf16 MXU operands --
    w1i = jnp.transpose(p["w1"], (0, 1, 3, 2)).reshape(KH * KW, Cmid, Cin)
    w1i = jnp.pad(w1i, ((0, 0), (0, 0), (0, CP - Cin)))          # (9, Cmid, CP)
    ws_t = jnp.transpose(p["ws"][0, 0], (1, 0))                  # (Cout, Cin)
    wsi = jnp.zeros((KH * KW, Cout, CP), jnp.float32)
    wsi = wsi.at[(KH // 2) * KW + (KW // 2), :, :Cin].set(ws_t)  # centre tap
    w1c = jnp.concatenate([w1i, wsi], axis=1).astype(jnp.bfloat16)
    w2i = (jnp.transpose(p["w2"], (0, 1, 3, 2))
           .reshape(KH * KW, Cout, Cmid).astype(jnp.bfloat16))

    # folded BN affines for the combined conv1+shortcut rows, column vectors
    s1c = jnp.concatenate([p["s1"], p["ss"]]).reshape(-1, 1).astype(jnp.float32)
    b1c = jnp.concatenate([p["b1"], p["bs"]]).reshape(-1, 1).astype(jnp.float32)
    s2 = p["s2"].reshape(-1, 1).astype(jnp.float32)
    b2 = p["b2"].reshape(-1, 1).astype(jnp.float32)

    # NCHW -> (N, C, H*W) is a contiguous, metadata-only reshape; pad channels
    # once to CP so every in-kernel tap block is sublane-tile aligned.
    x_flat = x_nchw.reshape(N, Cin, HW)
    if Cin < CP:
        x_flat = jnp.pad(x_flat, ((0, 0), (0, CP - Cin), (0, 0)))

    kernel = functools.partial(_basic_block_kernel,
                               H=H, W=W, NB=NB, Cmid=Cmid)

    out_flat = pl.pallas_call(
        kernel,
        out_shape=jax.ShapeDtypeStruct((N, Cout, HW), x_nchw.dtype),
        grid=(N // NB,),
        in_specs=[
            pl.BlockSpec((NB, CP, HW), lambda g: (g, 0, 0)),
            pl.BlockSpec((KH * KW, Cmid + Cout, CP), lambda g: (0, 0, 0)),
            pl.BlockSpec((Cmid + Cout, 1), lambda g: (0, 0)),
            pl.BlockSpec((Cmid + Cout, 1), lambda g: (0, 0)),
            pl.BlockSpec((KH * KW, Cout, Cmid), lambda g: (0, 0, 0)),
            pl.BlockSpec((Cout, 1), lambda g: (0, 0)),
            pl.BlockSpec((Cout, 1), lambda g: (0, 0)),
        ],
        out_specs=pl.BlockSpec((NB, Cout, HW), lambda g: (g, 0, 0)),
        compiler_params=pltpu.CompilerParams(
            dimension_semantics=("parallel",)),
    )(x_flat, w1c, s1c, b1c, w2i, s2, b2)

    # (N, Cout, H*W) -> (N, Cout, H, W): pure metadata reshape, no transpose.
    return out_flat.reshape(N, Cout, H, W)


# ---------------- reference (pure JAX) for correctness check ----------------
# MXU operands are bf16 in the kernel (f32 accumulation), so the reference
# applies the same operand rounding for an apples-to-apples comparison.

def _ref_conv_bn(x, w, scale, bias, padding, relu, residual=None):
    y = lax.conv_general_dilated(
        x.astype(jnp.bfloat16), w.astype(jnp.bfloat16),
        window_strides=(1, 1),
        padding=[(padding, padding), (padding, padding)],
        dimension_numbers=("NHWC", "HWIO", "NHWC"),
        preferred_element_type=jnp.float32)
    y = y * scale + bias
    if residual is not None:
        y = y + residual
    return jnp.maximum(y, 0.0) if relu else y


def _ref_block(x_nchw, p):
    x = jnp.transpose(x_nchw, (0, 2, 3, 1))
    y = _ref_conv_bn(x, p["w1"], p["s1"], p["b1"], 1, True)
    sc = _ref_conv_bn(x, p["ws"], p["ss"], p["bs"], 0, False)
    z = _ref_conv_bn(y, p["w2"], p["s2"], p["b2"], 1, True, residual=sc)
    return jnp.transpose(z, (0, 3, 1, 2))


# ---------------------------- parameter setup --------------------------------

def _fold_bn(gamma, beta, mean, var, eps=1e-5):
    scale = gamma / jnp.sqrt(var + eps)
    bias = beta - mean * scale
    return scale, bias


def _conv_weight(key, kh, kw, cin, cout):
    # kaiming-normal-ish (fan_out) deterministic init, HWIO layout
    fan_out = cout * kh * kw
    return (jax.random.normal(key, (kh, kw, cin, cout), jnp.float32)
            * jnp.sqrt(2.0 / fan_out))


def _bn(key, c):
    # gamma=1, beta=0 (PyTorch BN init); synthetic deterministic running stats
    # so the folded affine is non-trivial.  BN is evaluated in inference mode.
    k1, k2 = jax.random.split(key)
    gamma = jnp.ones((c,), jnp.float32)
    beta = jnp.zeros((c,), jnp.float32)
    mean = 0.1 * jax.random.normal(k1, (c,), jnp.float32)
    var = 1.0 + 0.05 * jax.random.uniform(k2, (c,), jnp.float32)
    return _fold_bn(gamma, beta, mean, var)


if __name__ == "__main__":
    key = jax.random.PRNGKey(0)
    ks = jax.random.split(key, 8)

    # BasicBlock(in_f=4, out_f=8, stride=1): shortcut is a 1x1 ConvBN.
    N, Cin, H, W = 2, 4, 16, 16
    Cout = 8

    x = jax.random.normal(ks[0], (N, Cin, H, W), jnp.float32)

    s1, b1 = _bn(ks[2], Cout)
    s2, b2 = _bn(ks[4], Cout)
    ss, bs = _bn(ks[6], Cout)
    params = {
        "w1": _conv_weight(ks[1], 3, 3, Cin, Cout), "s1": s1, "b1": b1,
        "w2": _conv_weight(ks[3], 3, 3, Cout, Cout), "s2": s2, "b2": b2,
        "ws": _conv_weight(ks[5], 1, 1, Cin, Cout), "ss": ss, "bs": bs,
    }

    out = basic_block_forward(x, params)
    out = jax.block_until_ready(out)

    ref = _ref_block(x, params)
    assert out.shape == (N, Cout, H, W), out.shape
    err = float(jnp.max(jnp.abs(out - ref)))
    assert jnp.allclose(out, ref, rtol=2e-2, atol=2e-2), err

    print("KERNEL_OK")
</pallas_src>

<mosaic_0001>
module attributes {stable_mosaic.version = 11 : i64} {
  func.func @_basic_block_kernel(%arg0: i32, %arg1: memref<2x8x256xf32, #tpu.memory_space<vmem>>, %arg2: memref<9x16x8xbf16, #tpu.memory_space<vmem>>, %arg3: memref<16x1xf32, #tpu.memory_space<vmem>>, %arg4: memref<16x1xf32, #tpu.memory_space<vmem>>, %arg5: memref<9x8x8xbf16, #tpu.memory_space<vmem>>, %arg6: memref<8x1xf32, #tpu.memory_space<vmem>>, %arg7: memref<8x1xf32, #tpu.memory_space<vmem>>, %arg8: memref<2x8x256xf32, #tpu.memory_space<vmem>>) attributes {dimension_semantics = [#tpu.dimension_semantics<parallel>], iteration_bounds = array<i64: 1>, scalar_prefetch = 0 : i64, scratch_operands = 0 : i64, tpu.core_type = #tpu.core_type<tc>, window_params = [{transform_indices = @transform_0, window_bounds = array<i64: 2, 8, 256>}, {pipeline_mode = #tpu.pipeline_mode<synchronous>, transform_indices = @transform_1, window_bounds = array<i64: 9, 16, 8>}, {pipeline_mode = #tpu.pipeline_mode<synchronous>, transform_indices = @transform_2, window_bounds = array<i64: 16, 1>}, {pipeline_mode = #tpu.pipeline_mode<synchronous>, transform_indices = @transform_3, window_bounds = array<i64: 16, 1>}, {pipeline_mode = #tpu.pipeline_mode<synchronous>, transform_indices = @transform_4, window_bounds = array<i64: 9, 8, 8>}, {pipeline_mode = #tpu.pipeline_mode<synchronous>, transform_indices = @transform_5, window_bounds = array<i64: 8, 1>}, {pipeline_mode = #tpu.pipeline_mode<synchronous>, transform_indices = @transform_6, window_bounds = array<i64: 8, 1>}, {transform_indices = @transform_7, window_bounds = array<i64: 2, 8, 256>}]} {
    %c0 = arith.constant 0 : index
    %c0_0 = arith.constant 0 : index
    %c0_1 = arith.constant 0 : index
    %0 = vector.load %arg1[%c0, %c0_0, %c0_1] : memref<2x8x256xf32, #tpu.memory_space<vmem>>, vector<1x8x256xf32>
    %1 = vector.shape_cast %0 : vector<1x8x256xf32> to vector<8x256xf32>
    %c1 = arith.constant 1 : index
    %c0_2 = arith.constant 0 : index
    %c0_3 = arith.constant 0 : index
    %2 = vector.load %arg1[%c1, %c0_2, %c0_3] : memref<2x8x256xf32, #tpu.memory_space<vmem>>, vector<1x8x256xf32>
    %3 = vector.shape_cast %2 : vector<1x8x256xf32> to vector<8x256xf32>
    %4 = tpu.concatenate %1, %3 in 1 : vector<8x256xf32>, vector<8x256xf32> -> vector<8x512xf32>
    %5 = tpu.iota {dimensions = array<i32: 1>} : vector<1x512xi32>
    %c255_i32 = arith.constant 255 : i32
    %6 = vector.broadcast %c255_i32 : i32 to vector<1x512xi32>
    %7 = arith.andi %5, %6 : vector<1x512xi32>
    %c15_i32 = arith.constant 15 : i32
    %8 = vector.broadcast %c15_i32 : i32 to vector<1x512xi32>
    %9 = arith.andi %5, %8 : vector<1x512xi32>
    %c16_i32 = arith.constant 16 : i32
    %10 = vector.broadcast %c16_i32 : i32 to vector<1x512xi32>
    %11 = arith.cmpi sge, %7, %10 : vector<1x512xi32>
    %c1_i32 = arith.constant 1 : i32
    %12 = vector.broadcast %c1_i32 : i32 to vector<1x512xi32>
    %13 = arith.cmpi sge, %9, %12 : vector<1x512xi32>
    %14 = arith.andi %11, %13 : vector<1x512xi1>
    %c16_i32_4 = arith.constant 16 : i32
    %15 = vector.broadcast %c16_i32_4 : i32 to vector<1x512xi32>
    %16 = arith.cmpi sge, %7, %15 : vector<1x512xi32>
    %c16_i32_5 = arith.constant 16 : i32
    %17 = vector.broadcast %c16_i32_5 : i32 to vector<1x512xi32>
    %18 = arith.cmpi sge, %7, %17 : vector<1x512xi32>
    %c15_i32_6 = arith.constant 15 : i32
    %19 = vector.broadcast %c15_i32_6 : i32 to vector<1x512xi32>
    %20 = arith.cmpi slt, %9, %19 : vector<1x512xi32>
    %21 = arith.andi %18, %20 : vector<1x512xi1>
    %c1_i32_7 = arith.constant 1 : i32
    %22 = vector.broadcast %c1_i32_7 : i32 to vector<1x512xi32>
    %23 = arith.cmpi sge, %9, %22 : vector<1x512xi32>
    %c15_i32_8 = arith.constant 15 : i32
    %24 = vector.broadcast %c15_i32_8 : i32 to vector<1x512xi32>
    %25 = arith.cmpi slt, %9, %24 : vector<1x512xi32>
    %c240_i32 = arith.constant 240 : i32
    %26 = vector.broadcast %c240_i32 : i32 to vector<1x512xi32>
    %27 = arith.cmpi slt, %7, %26 : vector<1x512xi32>
    %c1_i32_9 = arith.constant 1 : i32
    %28 = vector.broadcast %c1_i32_9 : i32 to vector<1x512xi32>
    %29 = arith.cmpi sge, %9, %28 : vector<1x512xi32>
    %30 = arith.andi %27, %29 : vector<1x512xi1>
    %c240_i32_10 = arith.constant 240 : i32
    %31 = vector.broadcast %c240_i32_10 : i32 to vector<1x512xi32>
    %32 = arith.cmpi slt, %7, %31 : vector<1x512xi32>
    %c240_i32_11 = arith.constant 240 : i32
    %33 = vector.broadcast %c240_i32_11 : i32 to vector<1x512xi32>
    %34 = arith.cmpi slt, %7, %33 : vector<1x512xi32>
    %c15_i32_12 = arith.constant 15 : i32
    %35 = vector.broadcast %c15_i32_12 : i32 to vector<1x512xi32>
    %36 = arith.cmpi slt, %9, %35 : vector<1x512xi32>
    %37 = arith.andi %34, %36 : vector<1x512xi1>
    %c17_i32 = arith.constant 17 : i32
    %38 = tpu.dynamic_rotate %4 by %c17_i32 dim 1 : vector<8x512xf32>, i32 -> vector<8x512xf32>
    %cst = arith.constant 0.000000e+00 : f32
    %39 = vector.shape_cast %14 : vector<1x512xi1> to vector<1x512xi1>
    %40 = vector.broadcast %39 : vector<1x512xi1> to vector<8x512xi1>
    %41 = vector.broadcast %cst : f32 to vector<8x512xf32>
    %42 = arith.select %40, %38, %41 : vector<8x512xi1>, vector<8x512xf32>
    %c0_13 = arith.constant 0 : index
    %c0_14 = arith.constant 0 : index
    %c0_15 = arith.constant 0 : index
    %43 = vector.load %arg2[%c0_13, %c0_14, %c0_15] : memref<9x16x8xbf16, #tpu.memory_space<vmem>>, vector<1x16x8xbf16>
    %44 = vector.shape_cast %43 : vector<1x16x8xbf16> to vector<16x8xbf16>
    %45 = arith.truncf %42 : vector<8x512xf32> to vector<8x512xbf16>
    %cst_16 = arith.constant dense<0.000000e+00> : vector<16x512xf32>
    %46 = tpu.matmul %44, %45, %cst_16 {dimension_numbers = #tpu.dot_dimension_numbers<[1], [0], [0], [1], [0, 0, 1, 1], [], []>} : vector<16x8xbf16>, vector<8x512xbf16>, vector<16x512xf32> -> vector<16x512xf32>
    %c16_i32_17 = arith.constant 16 : i32
    %47 = tpu.dynamic_rotate %4 by %c16_i32_17 dim 1 : vector<8x512xf32>, i32 -> vector<8x512xf32>
    %cst_18 = arith.constant 0.000000e+00 : f32
    %48 = vector.shape_cast %16 : vector<1x512xi1> to vector<1x512xi1>
    %49 = vector.broadcast %48 : vector<1x512xi1> to vector<8x512xi1>
    %50 = vector.broadcast %cst_18 : f32 to vector<8x512xf32>
    %51 = arith.select %49, %47, %50 : vector<8x512xi1>, vector<8x512xf32>
    %c1_19 = arith.constant 1 : index
    %c0_20 = arith.constant 0 : index
    %c0_21 = arith.constant 0 : index
    %52 = vector.load %arg2[%c1_19, %c0_20, %c0_21] : memref<9x16x8xbf16, #tpu.memory_space<vmem>>, vector<1x16x8xbf16>
    %53 = vector.shape_cast %52 : vector<1x16x8xbf16> to vector<16x8xbf16>
    %54 = arith.truncf %51 : vector<8x512xf32> to vector<8x512xbf16>
    %cst_22 = arith.constant dense<0.000000e+00> : vector<16x512xf32>
    %55 = tpu.matmul %53, %54, %cst_22 {dimension_numbers = #tpu.dot_dimension_numbers<[1], [0], [0], [1], [0, 0, 1, 1], [], []>} : vector<16x8xbf16>, vector<8x512xbf16>, vector<16x512xf32> -> vector<16x512xf32>
    %56 = arith.addf %46, %55 : vector<16x512xf32>
    %c15_i32_23 = arith.constant 15 : i32
    %57 = tpu.dynamic_rotate %4 by %c15_i32_23 dim 1 : vector<8x512xf32>, i32 -> vector<8x512xf32>
    %cst_24 = arith.constant 0.000000e+00 : f32
    %58 = vector.shape_cast %21 : vector<1x512xi1> to vector<1x512xi1>
    %59 = vector.broadcast %58 : vector<1x512xi1> to vector<8x512xi1>
    %60 = vector.broadcast %cst_24 : f32 to vector<8x512xf32>
    %61 = arith.select %59, %57, %60 : vector<8x512xi1>, vector<8x512xf32>
    %c2 = arith.constant 2 : index
    %c0_25 = arith.constant 0 : index
    %c0_26 = arith.constant 0 : index
    %62 = vector.load %arg2[%c2, %c0_25, %c0_26] : memref<9x16x8xbf16, #tpu.memory_space<vmem>>, vector<1x16x8xbf16>
    %63 = vector.shape_cast %62 : vector<1x16x8xbf16> to vector<16x8xbf16>
    %64 = arith.truncf %61 : vector<8x512xf32> to vector<8x512xbf16>
    %cst_27 = arith.constant dense<0.000000e+00> : vector<16x512xf32>
    %65 = tpu.matmul %63, %64, %cst_27 {dimension_numbers = #tpu.dot_dimension_numbers<[1], [0], [0], [1], [0, 0, 1, 1], [], []>} : vector<16x8xbf16>, vector<8x512xbf16>, vector<16x512xf32> -> vector<16x512xf32>
    %66 = arith.addf %56, %65 : vector<16x512xf32>
    %c1_i32_28 = arith.constant 1 : i32
    %67 = tpu.dynamic_rotate %4 by %c1_i32_28 dim 1 : vector<8x512xf32>, i32 -> vector<8x512xf32>
    %cst_29 = arith.constant 0.000000e+00 : f32
    %68 = vector.shape_cast %23 : vector<1x512xi1> to vector<1x512xi1>
    %69 = vector.broadcast %68 : vector<1x512xi1> to vector<8x512xi1>
    %70 = vector.broadcast %cst_29 : f32 to vector<8x512xf32>
    %71 = arith.select %69, %67, %70 : vector<8x512xi1>, vector<8x512xf32>
    %c3 = arith.constant 3 : index
    %c0_30 = arith.constant 0 : index
    %c0_31 = arith.constant 0 : index
    %72 = vector.load %arg2[%c3, %c0_30, %c0_31] : memref<9x16x8xbf16, #tpu.memory_space<vmem>>, vector<1x16x8xbf16>
    %73 = vector.shape_cast %72 : vector<1x16x8xbf16> to vector<16x8xbf16>
    %74 = arith.truncf %71 : vector<8x512xf32> to vector<8x512xbf16>
    %cst_32 = arith.constant dense<0.000000e+00> : vector<16x512xf32>
    %75 = tpu.matmul %73, %74, %cst_32 {dimension_numbers = #tpu.dot_dimension_numbers<[1], [0], [0], [1], [0, 0, 1, 1], [], []>} : vector<16x8xbf16>, vector<8x512xbf16>, vector<16x512xf32> -> vector<16x512xf32>
    %76 = arith.addf %66, %75 : vector<16x512xf32>
    %c4 = arith.constant 4 : index
    %c0_33 = arith.constant 0 : index
    %c0_34 = arith.constant 0 : index
    %77 = vector.load %arg2[%c4, %c0_33, %c0_34] : memref<9x16x8xbf16, #tpu.memory_space<vmem>>, vector<1x16x8xbf16>
    %78 = vector.shape_cast %77 : vector<1x16x8xbf16> to vector<16x8xbf16>
    %79 = arith.truncf %4 : vector<8x512xf32> to vector<8x512xbf16>
    %cst_35 = arith.constant dense<0.000000e+00> : vector<16x512xf32>
    %80 = tpu.matmul %78, %79, %cst_35 {dimension_numbers = #tpu.dot_dimension_numbers<[1], [0], [0], [1], [0, 0, 1, 1], [], []>} : vector<16x8xbf16>, vector<8x512xbf16>, vector<16x512xf32> -> vector<16x512xf32>
    %81 = arith.addf %76, %80 : vector<16x512xf32>
    %c511_i32 = arith.constant 511 : i32
    %82 = tpu.dynamic_rotate %4 by %c511_i32 dim 1 : vector<8x512xf32>, i32 -> vector<8x512xf32>
    %cst_36 = arith.constant 0.000000e+00 : f32
    %83 = vector.shape_cast %25 : vector<1x512xi1> to vector<1x512xi1>
    %84 = vector.broadcast %83 : vector<1x512xi1> to vector<8x512xi1>
    %85 = vector.broadcast %cst_36 : f32 to vector<8x512xf32>
    %86 = arith.select %84, %82, %85 : vector<8x512xi1>, vector<8x512xf32>
    %c5 = arith.constant 5 : index
    %c0_37 = arith.constant 0 : index
    %c0_38 = arith.constant 0 : index
    %87 = vector.load %arg2[%c5, %c0_37, %c0_38] : memref<9x16x8xbf16, #tpu.memory_space<vmem>>, vector<1x16x8xbf16>
    %88 = vector.shape_cast %87 : vector<1x16x8xbf16> to vector<16x8xbf16>
    %89 = arith.truncf %86 : vector<8x512xf32> to vector<8x512xbf16>
    %cst_39 = arith.constant dense<0.000000e+00> : vector<16x512xf32>
    %90 = tpu.matmul %88, %89, %cst_39 {dimension_numbers = #tpu.dot_dimension_numbers<[1], [0], [0], [1], [0, 0, 1, 1], [], []>} : vector<16x8xbf16>, vector<8x512xbf16>, vector<16x512xf32> -> vector<16x512xf32>
    %91 = arith.addf %81, %90 : vector<16x512xf32>
    %c497_i32 = arith.constant 497 : i32
    %92 = tpu.dynamic_rotate %4 by %c497_i32 dim 1 : vector<8x512xf32>, i32 -> vector<8x512xf32>
    %cst_40 = arith.constant 0.000000e+00 : f32
    %93 = vector.shape_cast %30 : vector<1x512xi1> to vector<1x512xi1>
    %94 = vector.broadcast %93 : vector<1x512xi1> to vector<8x512xi1>
    %95 = vector.broadcast %cst_40 : f32 to vector<8x512xf32>
    %96 = arith.select %94, %92, %95 : vector<8x512xi1>, vector<8x512xf32>
    %c6 = arith.constant 6 : index
    %c0_41 = arith.constant 0 : index
    %c0_42 = arith.constant 0 : index
    %97 = vector.load %arg2[%c6, %c0_41, %c0_42] : memref<9x16x8xbf16, #tpu.memory_space<vmem>>, vector<1x16x8xbf16>
    %98 = vector.shape_cast %97 : vector<1x16x8xbf16> to vector<16x8xbf16>
    %99 = arith.truncf %96 : vector<8x512xf32> to vector<8x512xbf16>
    %cst_43 = arith.constant dense<0.000000e+00> : vector<16x512xf32>
    %100 = tpu.matmul %98, %99, %cst_43 {dimension_numbers = #tpu.dot_dimension_numbers<[1], [0], [0], [1], [0, 0, 1, 1], [], []>} : vector<16x8xbf16>, vector<8x512xbf16>, vector<16x512xf32> -> vector<16x512xf32>
    %101 = arith.addf %91, %100 : vector<16x512xf32>
    %c496_i32 = arith.constant 496 : i32
    %102 = tpu.dynamic_rotate %4 by %c496_i32 dim 1 : vector<8x512xf32>, i32 -> vector<8x512xf32>
    %cst_44 = arith.constant 0.000000e+00 : f32
    %103 = vector.shape_cast %32 : vector<1x512xi1> to vector<1x512xi1>
    %104 = vector.broadcast %103 : vector<1x512xi1> to vector<8x512xi1>
    %105 = vector.broadcast %cst_44 : f32 to vector<8x512xf32>
    %106 = arith.select %104, %102, %105 : vector<8x512xi1>, vector<8x512xf32>
    %c7 = arith.constant 7 : index
    %c0_45 = arith.constant 0 : index
    %c0_46 = arith.constant 0 : index
    %107 = vector.load %arg2[%c7, %c0_45, %c0_46] : memref<9x16x8xbf16, #tpu.memory_space<vmem>>, vector<1x16x8xbf16>
    %108 = vector.shape_cast %107 : vector<1x16x8xbf16> to vector<16x8xbf16>
    %109 = arith.truncf %106 : vector<8x512xf32> to vector<8x512xbf16>
    %cst_47 = arith.constant dense<0.000000e+00> : vector<16x512xf32>
    %110 = tpu.matmul %108, %109, %cst_47 {dimension_numbers = #tpu.dot_dimension_numbers<[1], [0], [0], [1], [0, 0, 1, 1], [], []>} : vector<16x8xbf16>, vector<8x512xbf16>, vector<16x512xf32> -> vector<16x512xf32>
    %111 = arith.addf %101, %110 : vector<16x512xf32>
    %c495_i32 = arith.constant 495 : i32
    %112 = tpu.dynamic_rotate %4 by %c495_i32 dim 1 : vector<8x512xf32>, i32 -> vector<8x512xf32>
    %cst_48 = arith.constant 0.000000e+00 : f32
    %113 = vector.shape_cast %37 : vector<1x512xi1> to vector<1x512xi1>
    %114 = vector.broadcast %113 : vector<1x512xi1> to vector<8x512xi1>
    %115 = vector.broadcast %cst_48 : f32 to vector<8x512xf32>
    %116 = arith.select %114, %112, %115 : vector<8x512xi1>, vector<8x512xf32>
    %c8 = arith.constant 8 : index
    %c0_49 = arith.constant 0 : index
    %c0_50 = arith.constant 0 : index
    %117 = vector.load %arg2[%c8, %c0_49, %c0_50] : memref<9x16x8xbf16, #tpu.memory_space<vmem>>, vector<1x16x8xbf16>
    %118 = vector.shape_cast %117 : vector<1x16x8xbf16> to vector<16x8xbf16>
    %119 = arith.truncf %116 : vector<8x512xf32> to vector<8x512xbf16>
    %cst_51 = arith.constant dense<0.000000e+00> : vector<16x512xf32>
    %120 = tpu.matmul %118, %119, %cst_51 {dimension_numbers = #tpu.dot_dimension_numbers<[1], [0], [0], [1], [0, 0, 1, 1], [], []>} : vector<16x8xbf16>, vector<8x512xbf16>, vector<16x512xf32> -> vector<16x512xf32>
    %121 = arith.addf %111, %120 : vector<16x512xf32>
    %c0_52 = arith.constant 0 : index
    %c0_53 = arith.constant 0 : index
    %122 = vector.load %arg3[%c0_52, %c0_53] : memref<16x1xf32, #tpu.memory_space<vmem>>, vector<16x1xf32>
    %123 = vector.broadcast %122 : vector<16x1xf32> to vector<16x512xf32>
    %124 = arith.mulf %121, %123 : vector<16x512xf32>
    %c0_54 = arith.constant 0 : index
    %c0_55 = arith.constant 0 : index
    %125 = vector.load %arg4[%c0_54, %c0_55] : memref<16x1xf32, #tpu.memory_space<vmem>>, vector<16x1xf32>
    %126 = vector.broadcast %125 : vector<16x1xf32> to vector<16x512xf32>
    %127 = arith.addf %124, %126 : vector<16x512xf32>
    %128 = vector.extract_strided_slice %127 {offsets = [0, 0], sizes = [8, 512], strides = [1, 1]} : vector<16x512xf32> to vector<8x512xf32>
    %cst_56 = arith.constant 0.000000e+00 : f32
    %129 = vector.broadcast %cst_56 : f32 to vector<8x512xf32>
    %130 = arith.maximumf %128, %129 : vector<8x512xf32>
    %131 = vector.extract_strided_slice %127 {offsets = [8, 0], sizes = [8, 512], strides = [1, 1]} : vector<16x512xf32> to vector<8x512xf32>
    %c17_i32_57 = arith.constant 17 : i32
    %132 = tpu.dynamic_rotate %130 by %c17_i32_57 dim 1 : vector<8x512xf32>, i32 -> vector<8x512xf32>
    %cst_58 = arith.constant 0.000000e+00 : f32
    %133 = vector.shape_cast %14 : vector<1x512xi1> to vector<1x512xi1>
    %134 = vector.broadcast %133 : vector<1x512xi1> to vector<8x512xi1>
    %135 = vector.broadcast %cst_58 : f32 to vector<8x512xf32>
    %136 = arith.select %134, %132, %135 : vector<8x512xi1>, vector<8x512xf32>
    %c0_59 = arith.constant 0 : index
    %c0_60 = arith.constant 0 : index
    %c0_61 = arith.constant 0 : index
    %137 = vector.load %arg5[%c0_59, %c0_60, %c0_61] : memref<9x8x8xbf16, #tpu.memory_space<vmem>>, vector<1x8x8xbf16>
    %138 = vector.shape_cast %137 : vector<1x8x8xbf16> to vector<8x8xbf16>
    %139 = arith.truncf %136 : vector<8x512xf32> to vector<8x512xbf16>
    %cst_62 = arith.constant dense<0.000000e+00> : vector<8x512xf32>
    %140 = tpu.matmul %138, %139, %cst_62 {dimension_numbers = #tpu.dot_dimension_numbers<[1], [0], [0], [1], [0, 0, 1, 1], [], []>} : vector<8x8xbf16>, vector<8x512xbf16>, vector<8x512xf32> -> vector<8x512xf32>
    %c16_i32_63 = arith.constant 16 : i32
    %141 = tpu.dynamic_rotate %130 by %c16_i32_63 dim 1 : vector<8x512xf32>, i32 -> vector<8x512xf32>
    %cst_64 = arith.constant 0.000000e+00 : f32
    %142 = vector.shape_cast %16 : vector<1x512xi1> to vector<1x512xi1>
    %143 = vector.broadcast %142 : vector<1x512xi1> to vector<8x512xi1>
    %144 = vector.broadcast %cst_64 : f32 to vector<8x512xf32>
    %145 = arith.select %143, %141, %144 : vector<8x512xi1>, vector<8x512xf32>
    %c1_65 = arith.constant 1 : index
    %c0_66 = arith.constant 0 : index
    %c0_67 = arith.constant 0 : index
    %146 = vector.load %arg5[%c1_65, %c0_66, %c0_67] : memref<9x8x8xbf16, #tpu.memory_space<vmem>>, vector<1x8x8xbf16>
    %147 = vector.shape_cast %146 : vector<1x8x8xbf16> to vector<8x8xbf16>
    %148 = arith.truncf %145 : vector<8x512xf32> to vector<8x512xbf16>
    %cst_68 = arith.constant dense<0.000000e+00> : vector<8x512xf32>
    %149 = tpu.matmul %147, %148, %cst_68 {dimension_numbers = #tpu.dot_dimension_numbers<[1], [0], [0], [1], [0, 0, 1, 1], [], []>} : vector<8x8xbf16>, vector<8x512xbf16>, vector<8x512xf32> -> vector<8x512xf32>
    %150 = arith.addf %140, %149 : vector<8x512xf32>
    %c15_i32_69 = arith.constant 15 : i32
    %151 = tpu.dynamic_rotate %130 by %c15_i32_69 dim 1 : vector<8x512xf32>, i32 -> vector<8x512xf32>
    %cst_70 = arith.constant 0.000000e+00 : f32
    %152 = vector.shape_cast %21 : vector<1x512xi1> to vector<1x512xi1>
    %153 = vector.broadcast %152 : vector<1x512xi1> to vector<8x512xi1>
    %154 = vector.broadcast %cst_70 : f32 to vector<8x512xf32>
    %155 = arith.select %153, %151, %154 : vector<8x512xi1>, vector<8x512xf32>
    %c2_71 = arith.constant 2 : index
    %c0_72 = arith.constant 0 : index
    %c0_73 = arith.constant 0 : index
    %156 = vector.load %arg5[%c2_71, %c0_72, %c0_73] : memref<9x8x8xbf16, #tpu.memory_space<vmem>>, vector<1x8x8xbf16>
    %157 = vector.shape_cast %156 : vector<1x8x8xbf16> to vector<8x8xbf16>
    %158 = arith.truncf %155 : vector<8x512xf32> to vector<8x512xbf16>
    %cst_74 = arith.constant dense<0.000000e+00> : vector<8x512xf32>
    %159 = tpu.matmul %157, %158, %cst_74 {dimension_numbers = #tpu.dot_dimension_numbers<[1], [0], [0], [1], [0, 0, 1, 1], [], []>} : vector<8x8xbf16>, vector<8x512xbf16>, vector<8x512xf32> -> vector<8x512xf32>
    %160 = arith.addf %150, %159 : vector<8x512xf32>
    %c1_i32_75 = arith.constant 1 : i32
    %161 = tpu.dynamic_rotate %130 by %c1_i32_75 dim 1 : vector<8x512xf32>, i32 -> vector<8x512xf32>
    %cst_76 = arith.constant 0.000000e+00 : f32
    %162 = vector.shape_cast %23 : vector<1x512xi1> to vector<1x512xi1>
    %163 = vector.broadcast %162 : vector<1x512xi1> to vector<8x512xi1>
    %164 = vector.broadcast %cst_76 : f32 to vector<8x512xf32>
    %165 = arith.select %163, %161, %164 : vector<8x512xi1>, vector<8x512xf32>
    %c3_77 = arith.constant 3 : index
    %c0_78 = arith.constant 0 : index
    %c0_79 = arith.constant 0 : index
    %166 = vector.load %arg5[%c3_77, %c0_78, %c0_79] : memref<9x8x8xbf16, #tpu.memory_space<vmem>>, vector<1x8x8xbf16>
    %167 = vector.shape_cast %166 : vector<1x8x8xbf16> to vector<8x8xbf16>
    %168 = arith.truncf %165 : vector<8x512xf32> to vector<8x512xbf16>
    %cst_80 = arith.constant dense<0.000000e+00> : vector<8x512xf32>
    %169 = tpu.matmul %167, %168, %cst_80 {dimension_numbers = #tpu.dot_dimension_numbers<[1], [0], [0], [1], [0, 0, 1, 1], [], []>} : vector<8x8xbf16>, vector<8x512xbf16>, vector<8x512xf32> -> vector<8x512xf32>
    %170 = arith.addf %160, %169 : vector<8x512xf32>
    %c4_81 = arith.constant 4 : index
    %c0_82 = arith.constant 0 : index
    %c0_83 = arith.constant 0 : index
    %171 = vector.load %arg5[%c4_81, %c0_82, %c0_83] : memref<9x8x8xbf16, #tpu.memory_space<vmem>>, vector<1x8x8xbf16>
    %172 = vector.shape_cast %171 : vector<1x8x8xbf16> to vector<8x8xbf16>
    %173 = arith.truncf %130 : vector<8x512xf32> to vector<8x512xbf16>
    %cst_84 = arith.constant dense<0.000000e+00> : vector<8x512xf32>
    %174 = tpu.matmul %172, %173, %cst_84 {dimension_numbers = #tpu.dot_dimension_numbers<[1], [0], [0], [1], [0, 0, 1, 1], [], []>} : vector<8x8xbf16>, vector<8x512xbf16>, vector<8x512xf32> -> vector<8x512xf32>
    %175 = arith.addf %170, %174 : vector<8x512xf32>
    %c511_i32_85 = arith.constant 511 : i32
    %176 = tpu.dynamic_rotate %130 by %c511_i32_85 dim 1 : vector<8x512xf32>, i32 -> vector<8x512xf32>
    %cst_86 = arith.constant 0.000000e+00 : f32
    %177 = vector.shape_cast %25 : vector<1x512xi1> to vector<1x512xi1>
    %178 = vector.broadcast %177 : vector<1x512xi1> to vector<8x512xi1>
    %179 = vector.broadcast %cst_86 : f32 to vector<8x512xf32>
    %180 = arith.select %178, %176, %179 : vector<8x512xi1>, vector<8x512xf32>
    %c5_87 = arith.constant 5 : index
    %c0_88 = arith.constant 0 : index
    %c0_89 = arith.constant 0 : index
    %181 = vector.load %arg5[%c5_87, %c0_88, %c0_89] : memref<9x8x8xbf16, #tpu.memory_space<vmem>>, vector<1x8x8xbf16>
    %182 = vector.shape_cast %181 : vector<1x8x8xbf16> to vector<8x8xbf16>
    %183 = arith.truncf %180 : vector<8x512xf32> to vector<8x512xbf16>
    %cst_90 = arith.constant dense<0.000000e+00> : vector<8x512xf32>
    %184 = tpu.matmul %182, %183, %cst_90 {dimension_numbers = #tpu.dot_dimension_numbers<[1], [0], [0], [1], [0, 0, 1, 1], [], []>} : vector<8x8xbf16>, vector<8x512xbf16>, vector<8x512xf32> -> vector<8x512xf32>
    %185 = arith.addf %175, %184 : vector<8x512xf32>
    %c497_i32_91 = arith.constant 497 : i32
    %186 = tpu.dynamic_rotate %130 by %c497_i32_91 dim 1 : vector<8x512xf32>, i32 -> vector<8x512xf32>
    %cst_92 = arith.constant 0.000000e+00 : f32
    %187 = vector.shape_cast %30 : vector<1x512xi1> to vector<1x512xi1>
    %188 = vector.broadcast %187 : vector<1x512xi1> to vector<8x512xi1>
    %189 = vector.broadcast %cst_92 : f32 to vector<8x512xf32>
    %190 = arith.select %188, %186, %189 : vector<8x512xi1>, vector<8x512xf32>
    %c6_93 = arith.constant 6 : index
    %c0_94 = arith.constant 0 : index
    %c0_95 = arith.constant 0 : index
    %191 = vector.load %arg5[%c6_93, %c0_94, %c0_95] : memref<9x8x8xbf16, #tpu.memory_space<vmem>>, vector<1x8x8xbf16>
    %192 = vector.shape_cast %191 : vector<1x8x8xbf16> to vector<8x8xbf16>
    %193 = arith.truncf %190 : vector<8x512xf32> to vector<8x512xbf16>
    %cst_96 = arith.constant dense<0.000000e+00> : vector<8x512xf32>
    %194 = tpu.matmul %192, %193, %cst_96 {dimension_numbers = #tpu.dot_dimension_numbers<[1], [0], [0], [1], [0, 0, 1, 1], [], []>} : vector<8x8xbf16>, vector<8x512xbf16>, vector<8x512xf32> -> vector<8x512xf32>
    %195 = arith.addf %185, %194 : vector<8x512xf32>
    %c496_i32_97 = arith.constant 496 : i32
    %196 = tpu.dynamic_rotate %130 by %c496_i32_97 dim 1 : vector<8x512xf32>, i32 -> vector<8x512xf32>
    %cst_98 = arith.constant 0.000000e+00 : f32
    %197 = vector.shape_cast %32 : vector<1x512xi1> to vector<1x512xi1>
    %198 = vector.broadcast %197 : vector<1x512xi1> to vector<8x512xi1>
    %199 = vector.broadcast %cst_98 : f32 to vector<8x512xf32>
    %200 = arith.select %198, %196, %199 : vector<8x512xi1>, vector<8x512xf32>
    %c7_99 = arith.constant 7 : index
    %c0_100 = arith.constant 0 : index
    %c0_101 = arith.constant 0 : index
    %201 = vector.load %arg5[%c7_99, %c0_100, %c0_101] : memref<9x8x8xbf16, #tpu.memory_space<vmem>>, vector<1x8x8xbf16>
    %202 = vector.shape_cast %201 : vector<1x8x8xbf16> to vector<8x8xbf16>
    %203 = arith.truncf %200 : vector<8x512xf32> to vector<8x512xbf16>
    %cst_102 = arith.constant dense<0.000000e+00> : vector<8x512xf32>
    %204 = tpu.matmul %202, %203, %cst_102 {dimension_numbers = #tpu.dot_dimension_numbers<[1], [0], [0], [1], [0, 0, 1, 1], [], []>} : vector<8x8xbf16>, vector<8x512xbf16>, vector<8x512xf32> -> vector<8x512xf32>
    %205 = arith.addf %195, %204 : vector<8x512xf32>
    %c495_i32_103 = arith.constant 495 : i32
    %206 = tpu.dynamic_rotate %130 by %c495_i32_103 dim 1 : vector<8x512xf32>, i32 -> vector<8x512xf32>
    %cst_104 = arith.constant 0.000000e+00 : f32
    %207 = vector.shape_cast %37 : vector<1x512xi1> to vector<1x512xi1>
    %208 = vector.broadcast %207 : vector<1x512xi1> to vector<8x512xi1>
    %209 = vector.broadcast %cst_104 : f32 to vector<8x512xf32>
    %210 = arith.select %208, %206, %209 : vector<8x512xi1>, vector<8x512xf32>
    %c8_105 = arith.constant 8 : index
    %c0_106 = arith.constant 0 : index
    %c0_107 = arith.constant 0 : index
    %211 = vector.load %arg5[%c8_105, %c0_106, %c0_107] : memref<9x8x8xbf16, #tpu.memory_space<vmem>>, vector<1x8x8xbf16>
    %212 = vector.shape_cast %211 : vector<1x8x8xbf16> to vector<8x8xbf16>
    %213 = arith.truncf %210 : vector<8x512xf32> to vector<8x512xbf16>
    %cst_108 = arith.constant dense<0.000000e+00> : vector<8x512xf32>
    %214 = tpu.matmul %212, %213, %cst_108 {dimension_numbers = #tpu.dot_dimension_numbers<[1], [0], [0], [1], [0, 0, 1, 1], [], []>} : vector<8x8xbf16>, vector<8x512xbf16>, vector<8x512xf32> -> vector<8x512xf32>
    %215 = arith.addf %205, %214 : vector<8x512xf32>
    %c0_109 = arith.constant 0 : index
    %c0_110 = arith.constant 0 : index
    %216 = vector.load %arg6[%c0_109, %c0_110] : memref<8x1xf32, #tpu.memory_space<vmem>>, vector<8x1xf32>
    %217 = vector.broadcast %216 : vector<8x1xf32> to vector<8x512xf32>
    %218 = arith.mulf %215, %217 : vector<8x512xf32>
    %c0_111 = arith.constant 0 : index
    %c0_112 = arith.constant 0 : index
    %219 = vector.load %arg7[%c0_111, %c0_112] : memref<8x1xf32, #tpu.memory_space<vmem>>, vector<8x1xf32>
    %220 = vector.broadcast %219 : vector<8x1xf32> to vector<8x512xf32>
    %221 = arith.addf %218, %220 : vector<8x512xf32>
    %222 = arith.addf %221, %131 : vector<8x512xf32>
    %cst_113 = arith.constant 0.000000e+00 : f32
    %223 = vector.broadcast %cst_113 : f32 to vector<8x512xf32>
    %224 = arith.maximumf %222, %223 : vector<8x512xf32>
    %225 = vector.extract_strided_slice %224 {offsets = [0, 0], sizes = [8, 256], strides = [1, 1]} : vector<8x512xf32> to vector<8x256xf32>
    %c0_114 = arith.constant 0 : index
    %c0_115 = arith.constant 0 : index
    %c0_116 = arith.constant 0 : index
    %226 = vector.load %arg8[%c0_114, %c0_115, %c0_116] : memref<2x8x256xf32, #tpu.memory_space<vmem>>, vector<1x8x256xf32>
    %227 = vector.shape_cast %226 : vector<1x8x256xf32> to vector<8x256xf32>
    %228 = vector.shape_cast %225 : vector<8x256xf32> to vector<1x8x256xf32>
    tpu.vector_store %arg8[%c0_114, %c0_115, %c0_116], %228 {strides = array<i32>} : memref<2x8x256xf32, #tpu.memory_space<vmem>>, vector<1x8x256xf32>,
    %229 = vector.extract_strided_slice %224 {offsets = [0, 256], sizes = [8, 256], strides = [1, 1]} : vector<8x512xf32> to vector<8x256xf32>
    %c1_117 = arith.constant 1 : index
    %c0_118 = arith.constant 0 : index
    %c0_119 = arith.constant 0 : index
    %230 = vector.load %arg8[%c1_117, %c0_118, %c0_119] : memref<2x8x256xf32, #tpu.memory_space<vmem>>, vector<1x8x256xf32>
    %231 = vector.shape_cast %230 : vector<1x8x256xf32> to vector<8x256xf32>
    %232 = vector.shape_cast %229 : vector<8x256xf32> to vector<1x8x256xf32>
    tpu.vector_store %arg8[%c1_117, %c0_118, %c0_119], %232 {strides = array<i32>} : memref<2x8x256xf32, #tpu.memory_space<vmem>>, vector<1x8x256xf32>,
    return
  }
  func.func @transform_0(%arg0: i32) -> (i32, i32, i32) {
    %c0_i32 = arith.constant 0 : i32
    %c0_i32_0 = arith.constant 0 : i32
    %c0_i32_1 = arith.constant 0 : i32
    return %arg0, %c0_i32, %c0_i32_0 : i32, i32, i32
  }
  func.func @transform_1(%arg0: i32) -> (i32, i32, i32) {
    %c0_i32 = arith.constant 0 : i32
    %c0_i32_0 = arith.constant 0 : i32
    %c0_i32_1 = arith.constant 0 : i32
    %c0_i32_2 = arith.constant 0 : i32
    return %c0_i32, %c0_i32_0, %c0_i32_1 : i32, i32, i32
  }
  func.func @transform_2(%arg0: i32) -> (i32, i32) {
    %c0_i32 = arith.constant 0 : i32
    %c0_i32_0 = arith.constant 0 : i32
    %c0_i32_1 = arith.constant 0 : i32
    return %c0_i32, %c0_i32_0 : i32, i32
  }
  func.func @transform_3(%arg0: i32) -> (i32, i32) {
    %c0_i32 = arith.constant 0 : i32
    %c0_i32_0 = arith.constant 0 : i32
    %c0_i32_1 = arith.constant 0 : i32
    return %c0_i32, %c0_i32_0 : i32, i32
  }
  func.func @transform_4(%arg0: i32) -> (i32, i32, i32) {
    %c0_i32 = arith.constant 0 : i32
    %c0_i32_0 = arith.constant 0 : i32
    %c0_i32_1 = arith.constant 0 : i32
    %c0_i32_2 = arith.constant 0 : i32
    return %c0_i32, %c0_i32_0, %c0_i32_1 : i32, i32, i32
  }
  func.func @transform_5(%arg0: i32) -> (i32, i32) {
    %c0_i32 = arith.constant 0 : i32
    %c0_i32_0 = arith.constant 0 : i32
    %c0_i32_1 = arith.constant 0 : i32
    return %c0_i32, %c0_i32_0 : i32, i32
  }
  func.func @transform_6(%arg0: i32) -> (i32, i32) {
    %c0_i32 = arith.constant 0 : i32
    %c0_i32_0 = arith.constant 0 : i32
    %c0_i32_1 = arith.constant 0 : i32
    return %c0_i32, %c0_i32_0 : i32, i32
  }
  func.func @transform_7(%arg0: i32) -> (i32, i32, i32) {
    %c0_i32 = arith.constant 0 : i32
    %c0_i32_0 = arith.constant 0 : i32
    %c0_i32_1 = arith.constant 0 : i32
    return %arg0, %c0_i32, %c0_i32_0 : i32, i32, i32
  }
}

</mosaic_0001>

<bundles_post_ra>
// kernel: tpu_custom_call.1
= control target key start
LH: loop header
LB: loop body
LE: loop exit
PB: predicated region body
PF: predicated region fallthrough
CT: control target
= control target key end

     0   :  { %s2838_s9 = smov 16   ;;  %s2839_s10 = smov 17   ;;  %v2840_v6 = vmov 0   ;;  %s3628_s0 = inlined_call_operand.vmem [shape: f32[2,8,256], index: 0, kind: input, shape index: {}]   ;;  %s3629_s1 = inlined_call_operand.vmem [shape: bf16[9,16,8], index: 1, kind: input, shape index: {}]   ;;  %s3630_s2 = inlined_call_operand.vmem [shape: f32[16,1], index: 2, kind: input, shape index: {}]   ;;  %s3631_s3 = inlined_call_operand.vmem [shape: f32[16,1], index: 3, kind: input, shape index: {}]   ;;  %s3632_s4 = inlined_call_operand.vmem [shape: bf16[9,8,8], index: 4, kind: input, shape index: {}]   ;;  %s3633_s5 = inlined_call_operand.vmem [shape: f32[8,1], index: 5, kind: input, shape index: {}]   ;;  %s3634_s6 = inlined_call_operand.vmem [shape: f32[8,1], index: 6, kind: input, shape index: {}]   ;;  %s3635_s7 = inlined_call_operand.hbm [shape: f32[2,8,256], index: 7, kind: output, shape index: {}]  }
   0x1   :  { %v2892_v0 = vld [vmem:[%s3628_s0] sm:$0xff]  ;;  %v2897_v1 = vld [vmem:[%s3628_s0 + $0x8] sm:$0xff]  ;;  %v2902_v2 = vld [vmem:[%s3628_s0 + $0x10] sm:$0xff]  ;;  %195 = vmatprep.mubr.bf16.mxu0 %v2840_v6  ;;  %238 = vmatprep.mubr.bf16.mxu1 %v2840_v6  ;;  %s2842_s11 = smov 1  }
   0x2   :  { %v2645_v3 = vpack.i.bf16 %v2897_v1, %v2892_v0  ;;  %v2909_v4 = vld [vmem:[%s3628_s0 + $0x18] sm:$0xff]  ;;  %2725 = vset.pattern.permute.xlu0 %v2840_v6  ;;  %2726 = vset.pattern.permute.xlu1 %v2840_v6  ;;  %s2841_s0 = smov 15  }
   0x3   :  { %v2650_v5 = vpack.i.bf16 %v2909_v4, %v2902_v2 }
   0x4   :  { %2646 = vrot.lane.b32.xlu0 %v2645_v3, %s2838_s9  ;;  %2656 = vrot.lane.b32.xlu1 %v2645_v3, %s2839_s10 }
   0x8   :  { %2651 = vrot.lane.b32.xlu0 %v2650_v5, %s2838_s9  ;;  %2661 = vrot.lane.b32.xlu1 %v2650_v5, %s2839_s10 }
   0xc   :  { %2671 = vrot.lane.b32.xlu1 %v2650_v5, %s2841_s0  ;;  %2666 = vrot.lane.b32.xlu0 %v2645_v3, %s2841_s0 }
  0x10   :  { %2681 = vrot.lane.b32.xlu1 %v2650_v5, %s2842_s11  ;;  %2676 = vrot.lane.b32.xlu0 %v2645_v3, %s2842_s11 }
  0x11   :  { %12 = vsyncpa [#allocation3], 0  ;;  %s2843_s12 = smov 127   ;;  %s2844_s13 = smov 113   ;;  %v1352_v7 = vld [vmem:[%s3630_s2] sm:$0xff]  ;;  %v33_v9 = vlaneseq  ;;  %v3657_v20 = vmov 0 }
  0x12   :  { %s2845_s14 = smov 112   ;;  %s2846_s15 = smov 111   ;;  %v1372_v8 = vld [vmem:[%s3631_s3] sm:$0xff]  ;;  %vm3642_vm3 = vcmask 1043456   ;;  %v3665_v32 = vmov 0  ;;  %vm3643_vm12 = vcmask 64512  }
  0x13   :  { %v2939_v10 = vand.u32 127, %v33_v9 }
  0x14   :  { %2691 = vrot.lane.b32.xlu1 %v2650_v5, %s2843_s12  ;;  %2686 = vrot.lane.b32.xlu0 %v2645_v3, %s2843_s12 }
  0x15   :  { %v2942_v11 = vadd.s32 128, %v2939_v10  ;;  %v2945_v12 = vadd.s32 384, %v2939_v10  ;;  %v36_v13 = vadd.s32 256, %v2939_v10  ;;  %v38_v15 = vand.u32 255, %v2939_v10 }
  0x16   :  { %v42_v16 = vand.u32 15, %v2939_v10  ;;  %vm3638_vm1 = vcmp.lt.s32.totalorder %v2939_v10, 17  ;;  %vm3639_vm2 = vcmp.lt.s32.totalorder %v2939_v10, 16 }
  0x17   :  { %v43_v14 = vand.u32 15, %v2942_v11  ;;  %v45_v17 = vand.u32 15, %v2945_v12  ;;  %v40_v18 = vand.u32 255, %v36_v13  ;;  %v44_v22 = vand.u32 15, %v36_v13 }
  0x18   :  { %2701 = vrot.lane.b32.xlu1 %v2650_v5, %s2844_s13  ;;  %2696 = vrot.lane.b32.xlu0 %v2645_v3, %s2844_s13  ;;  %vm2958_vm4 = vcmp.ge.s32.totalorder %v38_v15, 16  ;;  %vm2962_vm5 = vcmp.ge.s32.totalorder %v42_v16, 1  ;;  %vm2999_vm15 = vcmp.lt.s32.totalorder %v42_v16, 15  ;;  %v2807_v15 = vld [vmem:[%s3629_s1 + $0x8] sm:$0xff]  }
  0x19   :  { %vm2952_vm0 = vcmp.ge.s32.totalorder %v43_v14, 1  ;;  %vm2971_vm7 = vcmp.ge.s32.totalorder %v45_v17, 1  ;;  %vm2975_vm8 = vcmp.ge.s32.totalorder %v40_v18, 16  ;;  %vm2981_vm9 = vcmp.ge.s32.totalorder %v44_v22, 1  ;;  %vm3637_vm13 = vmand %vm2958_vm4, %vm2962_vm5 }
  0x1a   :  { %v3658_v20 = vsel %vm2952_vm0, 4294967295, %v3657_v20  ;;  %v3666_v32 = vsel %vm2975_vm8, 4294967295, %v3665_v32  ;;  %vm2985_vm10 = vcmp.lt.s32.totalorder %v45_v17, 15  ;;  %vm2989_vm11 = vcmp.lt.s32.totalorder %v43_v14, 15  ;;  %vm3636_vm14 = vmand %vm2975_vm8, %vm2981_vm9 }
  0x1b   :  { %vm3003_vm6 = vcmp.lt.s32.totalorder %v44_v22, 15 }
  0x1c   :  { %2711 = vrot.lane.b32.xlu1 %v2650_v5, %s2845_s14  ;;  %2706 = vrot.lane.b32.xlu0 %v2645_v3, %s2845_s14 }
  0x20   :  { %2721 = vrot.lane.b32.xlu1 %v2650_v5, %s2846_s15  ;;  %2716 = vrot.lane.b32.xlu0 %v2645_v3, %s2846_s15 }
  0x24   :  { %1356 = vperm.xlu0 %2725, %v1352_v7   ;;  %1376 = vperm.xlu1 %2726, %v1372_v8  }
  0x76   :  { %v2647_v19 = vpop.permute.xlu0 %2646  ;;  %v2657_v21 = vpop.permute.xlu1 %2656 }
  0x77   :  { %v2649_v23 = vunpack.i.h.bf16 %v2647_v19  ;;  %v2648_v24 = vunpack.i.l.bf16 %v2647_v19  ;;  %v2659_v25 = vunpack.i.h.bf16 %v2657_v21  ;;  %v2658_v26 = vunpack.i.l.bf16 %v2657_v21 }
  0x79   :  { %v89_v29 = vsel %vm3638_vm1, %v2658_v26, %v2659_v25  ;;  %v120_v30 = vsel %vm3639_vm2, %v2648_v24, %v2649_v23 }
  0x7a   :  { %v100_v33 = vsel %vm2952_vm0, %v89_v29, 0.0  ;;  %v2652_v34 = vpop.permute.xlu0 %2651  ;;  %v138_v35 = vpack.c.bf16 %v120_v30, %v120_v30  ;;  %v2662_v36 = vpop.permute.xlu1 %2661 }
  0x7b   :  { %v2654_v40 = vunpack.i.h.bf16 %v2652_v34  ;;  %v2653_v41 = vunpack.i.l.bf16 %v2652_v34  ;;  %v2664_v42 = vunpack.i.h.bf16 %v2662_v36  ;;  %v2663_v43 = vunpack.i.l.bf16 %v2662_v36 }
  0x7c   :  { %2532 = vmatprep.subr.msk.bf16.mxu0 %vm3642_vm3, %v138_v35  ;;  %v106_v44 = vpack.c.bf16 %v100_v33, %v100_v33 }
  0x7d   :  { %v87_v47 = vsel %vm3638_vm1, %v2663_v43, %v2664_v42  ;;  %v88_v48 = vsel %vm3638_vm1, %v2659_v25, %v2663_v43  ;;  %v90_v49 = vsel %vm3638_vm1, %v2664_v42, %v2658_v26  ;;  %v118_v50 = vsel %vm3639_vm2, %v2653_v41, %v2654_v40 }
  0x7e   :  { %v102_v51 = vsel %vm2971_vm7, %v87_v47, 0.0  ;;  %v140_v52 = vpack.c.bf16 %v118_v50, %v118_v50  ;;  %v121_v53 = vsel %vm3639_vm2, %v2654_v40, %v2648_v24  ;;  %v119_v54 = vsel %vm3639_vm2, %v2649_v23, %v2653_v41  ;;  %v2672_v55 = vpop.permute.xlu1 %2671  ;;  %v2667_v56 = vpop.permute.xlu0 %2666  ;;  %vm3640_vm2 = vmand %vm2975_vm8, %vm3003_vm6 }
  0x7f   :  { %v130_v57 = vsel %vm2958_vm4, %v121_v53, 0.0  ;;  %v132_v58 = vsel %vm2975_vm8, %v119_v54, 0.0  ;;  %v108_v59 = vpack.c.bf16 %v102_v51, %v102_v51  ;;  %v99_v60 = vsel %vm3637_vm13, %v90_v49, 0.0  ;;  %v2808_v49 = vld [vmem:[%s3629_s1] sm:$0xff]  }
  0x80   :  { %2534 = vmatprep.subr.msk.bf16.mxu1 %vm3642_vm3, %v140_v52  ;;  %v137_v61 = vpack.c.bf16 %v130_v57, %v130_v57  ;;  %v139_v62 = vpack.c.bf16 %v132_v58, %v132_v58  ;;  %v105_v63 = vpack.c.bf16 %v99_v60, %v99_v60  ;;  %v101_v3 = vsel %vm3636_vm14, %v88_v48, 0.0 }
  0x81   :  { %v107_v5 = vpack.c.bf16 %v101_v3, %v101_v3  ;;  %v2674_v7 = vunpack.i.h.bf16 %v2672_v55  ;;  %v2673_v8 = vunpack.i.l.bf16 %v2672_v55  ;;  %v2669_v9 = vunpack.i.h.bf16 %v2667_v56  ;;  %v2809_v3 = vld [vmem:[%s3629_s1 + $0x10] sm:$0xff]  }
  0x82   :  { %v152_v13 = vsel %vm3642_vm3, %v137_v61, 0  ;;  %v158_v14 = vsel %vm3642_vm3, %v139_v62, 0  ;;  %v258_v16 = vsel %vm3642_vm3, %v105_v63, 0  ;;  %v2668_v17 = vunpack.i.l.bf16 %v2667_v56  ;;  %v2682_v18 = vpop.permute.xlu1 %2681  ;;  %v2677_v19 = vpop.permute.xlu0 %2676 }
  0x83   :  { %178 = vmatpush1.bf16.msra.mxu0 %v152_v13  ;;  %221 = vmatpush1.bf16.msra.mxu1 %v158_v14  ;;  %v264_v21 = vsel %vm3642_vm3, %v107_v5, 0  ;;  %vm3677_vm13 = vcmp.lt.s32.totalorder %v2939_v10, 15  ;;  %v2684_v24 = vunpack.i.h.bf16 %v2682_v18  ;;  %v2683_v30 = vunpack.i.l.bf16 %v2682_v18 }
  0x84   :  { %v364_v22 = vsel %vm3677_vm13, %v2673_v8, %v2674_v7  ;;  %vm3678_vm1 = vmmov %vm3677_vm13  ;;  %2537 = vmatprep.subr.msk.bf16.mxu0 %vm3642_vm3, %v106_v44  ;;  %2539 = vmatprep.subr.msk.bf16.mxu1 %vm3642_vm3, %v108_v59  ;;  %v2679_v35 = vunpack.i.h.bf16 %v2677_v19  ;;  %v2678_v36 = vunpack.i.l.bf16 %v2677_v19 }
  0x85   :  { %v365_v23 = vsel %vm3678_vm1, %v2669_v9, %v2673_v8  ;;  %v379_v25 = vsel %vm2985_vm10, %v364_v22, 0.0  ;;  %vm3679_vm14 = vmmov %vm3678_vm1 }
  0x86   :  { %v366_v26 = vsel %vm3679_vm14, %v2668_v17, %v2669_v9  ;;  %vm3680_vm13 = vmmov %vm3678_vm1  ;;  %v386_v34 = vpack.c.bf16 %v379_v25, %v379_v25  ;;  %2533 = vmatmul.mubr.msk.bf16.vlgmr.msra.gmra.mxu0 %vm3643_vm12, %v2807_v15  ;;  %2535 = vmatmul.mubr.msk.bf16.vlgmr.msra.gmra.mxu1 %vm3643_vm12, %v2807_v15  ;;  %v378_v42 = vsel %vm3640_vm2, %v365_v23, 0.0  ;;  %vm3682_vm14 = vcmp.lt.s32.totalorder %v2939_v10, 1  ;;  %v2692_v62 = vpop.permute.xlu1 %2691  ;;  %v2687_v63 = vpop.permute.xlu0 %2686 }
  0x87   :  { %v367_v29 = vsel %vm3680_vm13, %v2674_v7, %v2668_v17  ;;  %v377_v33 = vsel %vm2989_vm11, %v366_v26, 0.0  ;;  %vm3681_vm1 = vmand %vm2958_vm4, %vm2999_vm15  ;;  %284 = vmatpush1.bf16.msra.mxu0 %v258_v16  ;;  %327 = vmatpush1.bf16.msra.mxu1 %v264_v21  ;;  %v510_v43 = vsel %vm3682_vm14, %v2683_v30, %v2684_v24  ;;  %v385_v48 = vpack.c.bf16 %v378_v42, %v378_v42 }
  0x88   :  { %v384_v40 = vpack.c.bf16 %v377_v33, %v377_v33  ;;  %v376_v41 = vsel %vm3681_vm1, %v367_v29, 0.0  ;;  %vm3683_vm13 = vmmov %vm3682_vm14  ;;  %301 = vmatprep.mubr.bf16.mxu0 %v2840_v6  ;;  %344 = vmatprep.mubr.bf16.mxu1 %v2840_v6  ;;  %v525_v50 = vsel %vm2971_vm7, %v510_v43, 0.0  ;;  %v2694_v5 = vunpack.i.h.bf16 %v2692_v62 }
  0x89   :  { %v512_v44 = vsel %vm3683_vm13, %v2678_v36, %v2679_v35  ;;  %v383_v47 = vpack.c.bf16 %v376_v41, %v376_v41  ;;  %2546 = vmatprep.subr.msk.bf16.mxu1 %vm3642_vm3, %v386_v34  ;;  %vm3684_vm1 = vmmov %vm3683_vm13  ;;  %v402_v55 = vsel %vm3642_vm3, %v385_v48, 0  ;;  %v532_v57 = vpack.c.bf16 %v525_v50, %v525_v50 }
  0x8a   :  { %2544 = vmatprep.subr.msk.bf16.mxu0 %vm3642_vm3, %v384_v40  ;;  %v511_v51 = vsel %vm3684_vm1, %v2679_v35, %v2683_v30  ;;  %vm3685_vm14 = vmmov %vm3684_vm1  ;;  %v523_v53 = vsel %vm2952_vm0, %v512_v44, 0.0  ;;  %v2693_v7 = vunpack.i.l.bf16 %v2692_v62  ;;  %v2689_v8 = vunpack.i.h.bf16 %v2687_v63  ;;  %v2697_v22 = vpop.permute.xlu0 %2696 }
  0x8b   :  { %v513_v52 = vsel %vm3685_vm14, %v2684_v24, %v2678_v36  ;;  %v396_v54 = vsel %vm3642_vm3, %v383_v47, 0  ;;  %v530_v56 = vpack.c.bf16 %v523_v53, %v523_v53  ;;  %v524_v59 = vsel %vm2981_vm9, %v511_v51, 0.0  ;;  %v2810_v24 = vld [vmem:[%s3629_s1 + $0x18] sm:$0xff]  }
  0x8c   :  { %v522_v58 = vsel %vm2962_vm5, %v513_v52, 0.0  ;;  %v531_v61 = vpack.c.bf16 %v524_v59, %v524_v59  ;;  %v2688_v9 = vunpack.i.l.bf16 %v2687_v63  ;;  %vm3641_vm13 = vcmp.lt.s32.totalorder %v2939_v10, 127  ;;  %v2811_v52 = vld [vmem:[%s3629_s1 + $0x20] sm:$0xff]  }
  0x8d   :  { %v529_v60 = vpack.c.bf16 %v522_v58, %v522_v58  ;;  %v651_v15 = vpack.c.bf16 %v2897_v1, %v2897_v1  ;;  %v653_v16 = vpack.c.bf16 %v2909_v4, %v2909_v4  ;;  %v39_v17 = vand.u32 255, %v2942_v11  ;;  %v2702_v11 = vpop.permute.xlu1 %2701 }
  0x8e   :  { %2538 = vmatmul.mubr.msk.bf16.vlgmr.msra.gmra.mxu0 %vm3643_vm12, %v2808_v49  ;;  %2540 = vmatmul.mubr.msk.bf16.vlgmr.msra.gmra.mxu1 %vm3643_vm12, %v2808_v49  ;;  %v548_v14 = vsel %vm3642_vm3, %v531_v61, 0  ;;  %v778_v18 = vsel %vm3641_vm13, %v2689_v8, %v2693_v7  ;;  %v780_v19 = vsel %vm3641_vm13, %v2694_v5, %v2688_v9  ;;  %v650_v1 = vpack.c.bf16 %v2892_v0, %v2892_v0  ;;  %v2707_v51 = vpop.permute.xlu0 %2706 }
  0x8f   :  { %422 = vmatpush1.bf16.msra.mxu0 %v396_v54  ;;  %465 = vmatpush1.bf16.msra.mxu1 %v402_v55  ;;  %v542_v13 = vsel %vm3642_vm3, %v529_v60, 0  ;;  %v652_v4 = vpack.c.bf16 %v2902_v2, %v2902_v2  ;;  %v41_v21 = vand.u32 255, %v2945_v12  ;;  %vm3138_vm1 = vcmp.lt.s32.totalorder %v39_v17, 240  ;;  %v2812_v17 = vld [vmem:[%s3629_s1 + $0x28] sm:$0xff]  }
  0x90   :  { %439 = vmatprep.mubr.bf16.mxu0 %v2840_v6  ;;  %482 = vmatprep.mubr.bf16.mxu1 %v2840_v6  ;;  %v3686_v23 = vmov 0  ;;  %v777_v0 = vsel %vm3641_vm13, %v2693_v7, %v2694_v5  ;;  %v790_v2 = vsel %vm2989_vm11, %v778_v18, 0.0  ;;  %v779_v12 = vsel %vm3641_vm13, %v2688_v9, %v2689_v8 }
  0x91   :  { %2551 = vmatprep.subr.msk.bf16.mxu0 %vm3642_vm3, %v530_v56  ;;  %2553 = vmatprep.subr.msk.bf16.mxu1 %vm3642_vm3, %v532_v57  ;;  %v3687_v23 = vsel %vm3138_vm1, 4294967295, %v3686_v23  ;;  %v792_v25 = vsel %vm2985_vm10, %v780_v19, 0.0  ;;  %v2704_v26 = vunpack.i.h.bf16 %v2702_v11  ;;  %v2703_v29 = vunpack.i.l.bf16 %v2702_v11  ;;  %v2712_v50 = vpop.permute.xlu1 %2711 }
  0x92   :  { %v2699_v30 = vunpack.i.h.bf16 %v2697_v22  ;;  %v2698_v33 = vunpack.i.l.bf16 %v2697_v22  ;;  %v663_v34 = vsel %vm3642_vm3, %v650_v1, 0  ;;  %v669_v35 = vsel %vm3642_vm3, %v652_v4, 0 }
  0x93   :  { %vm3648_vm14 = vcmp.lt.s32.totalorder %v2939_v10, 113  ;;  %vm3156_vm2 = vcmp.lt.s32.totalorder %v41_v21, 240  ;;  %v3688_v36 = vmov 0  ;;  %v797_v40 = vpack.c.bf16 %v790_v2, %v790_v2 }
  0x94   :  { %v3689_v36 = vsel %vm3156_vm2, 4294967295, %v3688_v36  ;;  %v799_v41 = vpack.c.bf16 %v792_v25, %v792_v25  ;;  %v789_v42 = vsel %vm2999_vm15, %v779_v12, 0.0  ;;  %v791_v43 = vsel %vm3003_vm6, %v777_v0, 0.0 }
  0x95   :  { %v924_v44 = vsel %vm3648_vm14, %v2699_v30, %v2703_v29  ;;  %v926_v47 = vsel %vm3648_vm14, %v2704_v26, %v2698_v33  ;;  %v796_v48 = vpack.c.bf16 %v789_v42, %v789_v42  ;;  %v798_v49 = vpack.c.bf16 %v791_v43, %v791_v43 }
  0x96   :  { %2545 = vmatmul.mubr.msk.bf16.vlgmr.msra.gmra.mxu0 %vm3643_vm12, %v2809_v3  ;;  %2547 = vmatmul.mubr.msk.bf16.vlgmr.msra.gmra.mxu1 %vm3643_vm12, %v2809_v3  ;;  %v923_v53 = vsel %vm3648_vm14, %v2703_v29, %v2704_v26  ;;  %v925_v55 = vsel %vm3648_vm14, %v2698_v33, %v2699_v30  ;;  %v2714_v57 = vunpack.i.h.bf16 %v2712_v50  ;;  %v2713_v58 = vunpack.i.l.bf16 %v2712_v50 }
  0x97   :  { %568 = vmatpush1.bf16.msra.mxu0 %v542_v13  ;;  %611 = vmatpush1.bf16.msra.mxu1 %v548_v14  ;;  %v2709_v59 = vunpack.i.h.bf16 %v2707_v51  ;;  %v2708_v60 = vunpack.i.l.bf16 %v2707_v51  ;;  %v935_v5 = vsel %vm2962_vm5, %v925_v55, 0.0  ;;  %v937_v7 = vsel %vm2981_vm9, %v923_v53, 0.0  ;;  %v2814_v53 = vld [vmem:[%s3629_s1 + $0x38] sm:$0xff]  }
  0x98   :  { %585 = vmatprep.mubr.bf16.mxu0 %v2840_v6  ;;  %628 = vmatprep.mubr.bf16.mxu1 %v2840_v6  ;;  %v942_v13 = vpack.c.bf16 %v935_v5, %v935_v5  ;;  %v944_v14 = vpack.c.bf16 %v937_v7, %v937_v7 }
  0x99   :  { %2558 = vmatprep.subr.msk.bf16.mxu0 %vm3642_vm3, %v651_v15  ;;  %2560 = vmatprep.subr.msk.bf16.mxu1 %vm3642_vm3, %v653_v16  ;;  %vm3692_vm3 = vmand %vm3138_vm1, %vm2952_vm0  ;;  %vm3652_vm0 = vcmp.lt.s32.totalorder %v2939_v10, 112  ;;  %v2722_v15 = vpop.permute.xlu1 %2721  ;;  %v2717_v16 = vpop.permute.xlu0 %2716 }
  0x9a   :  { %v936_v54 = vsel %vm3692_vm3, %v924_v44, 0.0  ;;  %vm3695_vm3 = vcmask 64512   ;;  %v1070_v8 = vsel %vm3652_vm0, %v2709_v59, %v2713_v58  ;;  %v1072_v9 = vsel %vm3652_vm0, %v2714_v57, %v2708_v60 }
  0x9b   :  { %v943_v63 = vpack.c.bf16 %v936_v54, %v936_v54  ;;  %v1082_v18 = vsel %vm3138_vm1, %v1070_v8, 0.0  ;;  %v1084_v19 = vsel %vm3156_vm2, %v1072_v9, 0.0  ;;  %v2724_v1 = vunpack.i.h.bf16 %v2722_v15 }
  0x9c   :  { %v2723_v4 = vunpack.i.l.bf16 %v2722_v15  ;;  %v2719_v11 = vunpack.i.h.bf16 %v2717_v16  ;;  %v2718_v21 = vunpack.i.l.bf16 %v2717_v16  ;;  %v1089_v0 = vpack.c.bf16 %v1082_v18, %v1082_v18 }
  0x9d   :  { %v1091_v2 = vpack.c.bf16 %v1084_v19, %v1084_v19  ;;  %v1071_v12 = vsel %vm3652_vm0, %v2708_v60, %v2709_v59  ;;  %v1069_v25 = vsel %vm3652_vm0, %v2713_v58, %v2714_v57 }
  0x9e   :  { %2552 = vmatmul.mubr.msk.bf16.vlgmr.msra.gmra.mxu0 %vm3643_vm12, %v2810_v24  ;;  %2554 = vmatmul.mubr.msk.bf16.vlgmr.msra.gmra.mxu1 %vm3643_vm12, %v2810_v24  ;;  %vm3690_vm12 = vcmask 1043456   ;;  %v1088_v30 = vpack.c.bf16 %v1071_v12, %v1071_v12  ;;  %v1090_v33 = vpack.c.bf16 %v1069_v25, %v1069_v25 }
  0x9f   :  { %689 = vmatpush1.bf16.msra.mxu0 %v663_v34  ;;  %732 = vmatpush1.bf16.msra.mxu1 %v669_v35  ;;  %vm3691_vm13 = vmmov %vm3690_vm12  ;;  %v2813_v34 = vld [vmem:[%s3629_s1 + $0x30] sm:$0xff]  }
  0xa0   :  { %706 = vmatprep.mubr.bf16.mxu0 %v2840_v6  ;;  %749 = vmatprep.mubr.bf16.mxu1 %v2840_v6  ;;  %v809_v61 = vsel %vm3691_vm13, %v796_v48, 0  ;;  %vm3694_vm8 = vmmov %vm3691_vm13 }
  0xa1   :  { %2565 = vmatprep.subr.msk.bf16.mxu0 %vm3690_vm12, %v797_v40  ;;  %2567 = vmatprep.subr.msk.bf16.mxu1 %vm3691_vm13, %v799_v41  ;;  %vm3693_vm12 = vmand %vm3156_vm2, %vm2971_vm7  ;;  %v815_v62 = vsel %vm3694_vm8, %v798_v49, 0 }
  0xa2   :  { %v938_v56 = vsel %vm3693_vm12, %v926_v47, 0.0  ;;  %vm3696_vm12 = vmmov %vm3695_vm3 }
  0xa3   :  { %v945_v3 = vpack.c.bf16 %v938_v56, %v938_v56  ;;  %vm3697_vm13 = vmmov %vm3694_vm8  ;;  %v2815_v56 = vld [vmem:[%s3629_s1 + $0x40] sm:$0xff]  }
  0xa6   :  { %2559 = vmatmul.mubr.msk.bf16.vlgmr.msra.gmra.mxu0 %vm3695_vm3, %v2811_v52  ;;  %2561 = vmatmul.mubr.msk.bf16.vlgmr.msra.gmra.mxu1 %vm3696_vm12, %v2811_v52  ;;  %vm3698_vm3 = vmmov %vm3694_vm8 }
  0xa7   :  { %835 = vmatpush1.bf16.msra.mxu0 %v809_v61  ;;  %878 = vmatpush1.bf16.msra.mxu1 %v815_v62  ;;  %v955_v22 = vsel %vm3698_vm3, %v942_v13, 0  ;;  %vm3699_vm12 = vmmov %vm3698_vm3 }
  0xa8   :  { %852 = vmatprep.mubr.bf16.mxu0 %v2840_v6  ;;  %895 = vmatprep.mubr.bf16.mxu1 %v2840_v6  ;;  %v961_v24 = vsel %vm3699_vm12, %v944_v14, 0  ;;  %vm3649_vm3 = vmand %vm3138_vm1, %vm2989_vm11 }
  0xa9   :  { %2572 = vmatprep.subr.msk.bf16.mxu0 %vm3694_vm8, %v943_v63  ;;  %2574 = vmatprep.subr.msk.bf16.mxu1 %vm3697_vm13, %v945_v3  ;;  %vm3650_vm8 = vcmp.lt.s32.totalorder %v2939_v10, 111  ;;  %vm3700_vm13 = vcmask 64512   ;;  %vm3651_vm12 = vmand %vm3156_vm2, %vm2985_vm10 }
  0xaa   :  { %vm3701_vm14 = vmmov %vm3700_vm13  ;;  %v1216_v26 = vsel %vm3650_vm8, %v2719_v11, %v2723_v4  ;;  %v1218_v29 = vsel %vm3650_vm8, %v2724_v1, %v2718_v21  ;;  %v1215_v35 = vsel %vm3650_vm8, %v2723_v4, %v2724_v1  ;;  %v1217_v41 = vsel %vm3650_vm8, %v2718_v21, %v2719_v11 }
  0xab   :  { %v1228_v40 = vsel %vm3649_vm3, %v1216_v26, 0.0  ;;  %v1230_v42 = vsel %vm3651_vm12, %v1218_v29, 0.0  ;;  %v1227_v49 = vsel %vm2999_vm15, %v1217_v41, 0.0  ;;  %v1229_v50 = vsel %vm3003_vm6, %v1215_v35, 0.0 }
  0xac   :  { %v1235_v47 = vpack.c.bf16 %v1228_v40, %v1228_v40  ;;  %v1237_v48 = vpack.c.bf16 %v1230_v42, %v1230_v42  ;;  %vm3705_vm3 = vcmask 64512   ;;  %v1234_v51 = vpack.c.bf16 %v1227_v49, %v1227_v49 }
  0xad   :  { %vm3706_vm8 = vmmov %vm3705_vm3  ;;  %v1236_v52 = vpack.c.bf16 %v1229_v50, %v1229_v50 }
  0xae   :  { %2566 = vmatmul.mubr.msk.bf16.vlgmr.msra.gmra.mxu0 %vm3700_vm13, %v2812_v17  ;;  %2568 = vmatmul.mubr.msk.bf16.vlgmr.msra.gmra.mxu1 %vm3701_vm14, %v2812_v17  ;;  %vm3702_vm14 = vcmask 1043456   ;;  %vm3710_vm0 = vmmov %vm3706_vm8 }
  0xaf   :  { %981 = vmatpush1.bf16.msra.mxu0 %v955_v22  ;;  %1024 = vmatpush1.bf16.msra.mxu1 %v961_v24  ;;  %vm3703_vm13 = vmmov %vm3702_vm14 }
  0xb0   :  { %998 = vmatprep.mubr.bf16.mxu0 %v2840_v6  ;;  %1041 = vmatprep.mubr.bf16.mxu1 %v2840_v6  ;;  %v1107_v44 = vsel %vm3703_vm13, %v1090_v33, 0  ;;  %vm3708_vm12 = vmmov %vm3703_vm13 }
  0xb1   :  { %2579 = vmatprep.subr.msk.bf16.mxu0 %vm3702_vm14, %v1089_v0  ;;  %2581 = vmatprep.subr.msk.bf16.mxu1 %vm3703_vm13, %v1091_v2  ;;  %vm3704_vm14 = vmmov %vm3703_vm13  ;;  %v1247_v54 = vsel %vm3708_vm12, %v1234_v51, 0 }
  0xb2   :  { %v1101_v43 = vsel %vm3704_vm14, %v1088_v30, 0  ;;  %vm3707_vm14 = vmmov %vm3703_vm13 }
  0xb6   :  { %2573 = vmatmul.mubr.msk.bf16.vlgmr.msra.gmra.mxu0 %vm3705_vm3, %v2813_v34  ;;  %2575 = vmatmul.mubr.msk.bf16.vlgmr.msra.gmra.mxu1 %vm3706_vm8, %v2813_v34  ;;  %vm3709_vm3 = vmmov %vm3708_vm12 }
  0xb7   :  { %1127 = vmatpush1.bf16.msra.mxu0 %v1101_v43  ;;  %1170 = vmatpush1.bf16.msra.mxu1 %v1107_v44  ;;  %v1253_v55 = vsel %vm3709_vm3, %v1236_v52, 0 }
  0xb8   :  { %1144 = vmatprep.mubr.bf16.mxu0 %v2840_v6  ;;  %1187 = vmatprep.mubr.bf16.mxu1 %v2840_v6 }
  0xb9   :  { %2586 = vmatprep.subr.msk.bf16.mxu0 %vm3707_vm14, %v1235_v47  ;;  %2588 = vmatprep.subr.msk.bf16.mxu1 %vm3703_vm13, %v1237_v48  ;;  %vm3711_vm14 = vmmov %vm3710_vm0 }
  0xba   :  { %vm3712_vm13 = vmmov %vm3710_vm0 }
  0xbe   :  { %2580 = vmatmul.mubr.msk.bf16.vlgmr.msra.gmra.mxu0 %vm3706_vm8, %v2814_v53  ;;  %2582 = vmatmul.mubr.msk.bf16.vlgmr.msra.gmra.mxu1 %vm3710_vm0, %v2814_v53  ;;  %vm3713_vm0 = vcmp.lt.s32.totalorder %v2939_v10, 16 }
  0xbf   :  { %1273 = vmatpush1.bf16.msra.mxu0 %v1247_v54  ;;  %1316 = vmatpush1.bf16.msra.mxu1 %v1253_v55  ;;  %vm3714_vm12 = vmmov %vm3713_vm0 }
  0xc0   :  { %1290 = vmatprep.mubr.bf16.mxu0 %v2840_v6  ;;  %1333 = vmatprep.mubr.bf16.mxu1 %v2840_v6  ;;  %vm3715_vm3 = vmmov %vm3713_vm0 }
  0xc1   :  { %vm3716_vm8 = vmmov %vm3713_vm0 }
  0xc6   :  { %2587 = vmatmul.mubr.msk.bf16.vlgmr.msra.gmra.mxu0 %vm3711_vm14, %v2815_v56  ;;  %2589 = vmatmul.mubr.msk.bf16.vlgmr.msra.gmra.mxu1 %vm3712_vm13, %v2815_v56  ;;  %vm3717_vm14 = vnez %v3666_v32  ;;  %vm3718_vm13 = vcmask 1043456  }
  0xc7   :  { %1486 = vmatprep.mubr.bf16.mxu0 %v2840_v6  ;;  %1527 = vmatprep.mubr.bf16.mxu1 %v2840_v6 }
 0x146   :  { %v3293_v57 = vpop.f32.mrf.mxu0  ;;  %v3295_v58 = vpop.f32.mrf.mxu1 }
 0x148   :  { %v3297_v59 = vpop.f32.mrf.mxu0  ;;  %v3299_v60 = vpop.f32.mrf.mxu1 }
 0x14a   :  { %v201_v61 = vpop.f32.mrf.mxu0  ;;  %v244_v62 = vpop.f32.mrf.mxu1 }
 0x14c   :  { %v203_v63 = vpop.f32.mrf.mxu0  ;;  %v246_v3 = vpop.f32.mrf.mxu1 }
 0x14e   :  { %v3301_v5 = vpop.f32.mrf.mxu0  ;;  %v3303_v7 = vpop.f32.mrf.mxu1 }
 0x150   :  { %v3305_v8 = vpop.f32.mrf.mxu0  ;;  %v3307_v9 = vpop.f32.mrf.mxu1 }
 0x152   :  { %v307_v13 = vpop.f32.mrf.mxu0  ;;  %v350_v14 = vpop.f32.mrf.mxu1 }
 0x153   :  { %v308_v15 = vadd.f32 %v307_v13, %v201_v61  ;;  %v351_v16 = vadd.f32 %v350_v14, %v244_v62 }
 0x154   :  { %v309_v17 = vpop.f32.mrf.mxu0  ;;  %v352_v18 = vpop.f32.mrf.mxu1 }
 0x155   :  { %v310_v19 = vadd.f32 %v309_v17, %v203_v63  ;;  %v353_v1 = vadd.f32 %v352_v18, %v246_v3 }
 0x156   :  { %v441_v4 = vpop.f32.mrf.mxu0  ;;  %v484_v11 = vpop.f32.mrf.mxu1 }
 0x158   :  { %v443_v21 = vpop.f32.mrf.mxu0  ;;  %v486_v22 = vpop.f32.mrf.mxu1 }
 0x15a   :  { %v445_v24 = vpop.f32.mrf.mxu0  ;;  %v488_v0 = vpop.f32.mrf.mxu1 }
 0x15b   :  { %v497_v2 = vadd.f32 %v445_v24, %v308_v15  ;;  %v499_v12 = vadd.f32 %v488_v0, %v351_v16 }
 0x15c   :  { %v447_v25 = vpop.f32.mrf.mxu0  ;;  %v490_v26 = vpop.f32.mrf.mxu1 }
 0x15d   :  { %v498_v29 = vadd.f32 %v447_v25, %v310_v19  ;;  %v500_v30 = vadd.f32 %v490_v26, %v353_v1 }
 0x15e   :  { %v587_v33 = vpop.f32.mrf.mxu0  ;;  %v630_v34 = vpop.f32.mrf.mxu1 }
 0x160   :  { %v589_v35 = vpop.f32.mrf.mxu0  ;;  %v632_v40 = vpop.f32.mrf.mxu1 }
 0x162   :  { %v591_v41 = vpop.f32.mrf.mxu0  ;;  %v634_v42 = vpop.f32.mrf.mxu1 }
 0x163   :  { %v643_v43 = vadd.f32 %v591_v41, %v497_v2  ;;  %v645_v44 = vadd.f32 %v634_v42, %v499_v12 }
 0x164   :  { %v593_v47 = vpop.f32.mrf.mxu0  ;;  %v636_v48 = vpop.f32.mrf.mxu1 }
 0x165   :  { %v644_v49 = vadd.f32 %v593_v47, %v498_v29  ;;  %v646_v50 = vadd.f32 %v636_v48, %v500_v30  ;;  %v306_v47 = vadd.f32 %v3305_v8, %v3297_v59  ;;  %v349_v48 = vadd.f32 %v3307_v9, %v3299_v60 }
 0x166   :  { %v708_v51 = vpop.f32.mrf.mxu0  ;;  %v751_v52 = vpop.f32.mrf.mxu1 }
 0x168   :  { %v710_v53 = vpop.f32.mrf.mxu0  ;;  %v753_v54 = vpop.f32.mrf.mxu1 }
 0x16a   :  { %v712_v55 = vpop.f32.mrf.mxu0  ;;  %v755_v56 = vpop.f32.mrf.mxu1 }
 0x16b   :  { %v764_v61 = vadd.f32 %v712_v55, %v643_v43  ;;  %v766_v62 = vadd.f32 %v755_v56, %v645_v44  ;;  %v304_v43 = vadd.f32 %v3301_v5, %v3293_v57  ;;  %v347_v44 = vadd.f32 %v3303_v7, %v3295_v58 }
 0x16c   :  { %v714_v63 = vpop.f32.mrf.mxu0  ;;  %v757_v3 = vpop.f32.mrf.mxu1 }
 0x16d   :  { %v765_v13 = vadd.f32 %v714_v63, %v644_v49  ;;  %v767_v14 = vadd.f32 %v757_v3, %v646_v50  ;;  %v493_v55 = vadd.f32 %v441_v4, %v304_v43  ;;  %v495_v56 = vadd.f32 %v484_v11, %v347_v44 }
 0x16e   :  { %v854_v15 = vpop.f32.mrf.mxu0  ;;  %v897_v16 = vpop.f32.mrf.mxu1  ;;  %v494_v63 = vadd.f32 %v443_v21, %v306_v47  ;;  %v496_v3 = vadd.f32 %v486_v22, %v349_v48 }
 0x16f   :  { %v639_v57 = vadd.f32 %v587_v33, %v493_v55  ;;  %v641_v5 = vadd.f32 %v630_v34, %v495_v56 }
 0x170   :  { %v856_v17 = vpop.f32.mrf.mxu0  ;;  %v899_v18 = vpop.f32.mrf.mxu1  ;;  %v640_v7 = vadd.f32 %v589_v35, %v494_v63 }
 0x171   :  { %v762_v60 = vadd.f32 %v751_v52, %v641_v5 }
 0x172   :  { %v858_v19 = vpop.f32.mrf.mxu0  ;;  %v901_v1 = vpop.f32.mrf.mxu1  ;;  %v761_v9 = vadd.f32 %v710_v53, %v640_v7 }
 0x173   :  { %v910_v24 = vadd.f32 %v858_v19, %v764_v61  ;;  %v912_v0 = vadd.f32 %v901_v1, %v766_v62  ;;  %v642_v1 = vadd.f32 %v632_v40, %v496_v3 }
 0x174   :  { %v860_v2 = vpop.f32.mrf.mxu0  ;;  %v903_v12 = vpop.f32.mrf.mxu1  ;;  %v907_v21 = vadd.f32 %v856_v17, %v761_v9 }
 0x175   :  { %v911_v25 = vadd.f32 %v860_v2, %v765_v13  ;;  %v913_v26 = vadd.f32 %v903_v12, %v767_v14  ;;  %v760_v2 = vadd.f32 %v708_v51, %v639_v57  ;;  %v763_v12 = vadd.f32 %v753_v54, %v642_v1 }
 0x176   :  { %v1000_v29 = vpop.f32.mrf.mxu0  ;;  %v1043_v30 = vpop.f32.mrf.mxu1 }
 0x177   :  { %v909_v22 = vadd.f32 %v899_v18, %v763_v12 }
 0x178   :  { %v1002_v41 = vpop.f32.mrf.mxu0  ;;  %v1045_v42 = vpop.f32.mrf.mxu1 }
 0x179   :  { %v1053_v35 = vadd.f32 %v1002_v41, %v907_v21  ;;  %v1055_v40 = vadd.f32 %v1045_v42, %v909_v22 }
 0x17a   :  { %v1004_v49 = vpop.f32.mrf.mxu0  ;;  %v1047_v50 = vpop.f32.mrf.mxu1 }
 0x17b   :  { %v1056_v61 = vadd.f32 %v1004_v49, %v910_v24  ;;  %v1058_v62 = vadd.f32 %v1047_v50, %v912_v0  ;;  %v906_v24 = vadd.f32 %v854_v15, %v760_v2  ;;  %v908_v0 = vadd.f32 %v897_v16, %v762_v60  ;;  %v1357_v15 = vpop.permute.xlu0 %1356 }
 0x17c   :  { %v1006_v13 = vpop.f32.mrf.mxu0  ;;  %v1049_v14 = vpop.f32.mrf.mxu1 }
 0x17d   :  { %v1057_v19 = vadd.f32 %v1006_v13, %v911_v25  ;;  %v1059_v58 = vadd.f32 %v1049_v14, %v913_v26  ;;  %v1052_v33 = vadd.f32 %v1000_v29, %v906_v24  ;;  %v1054_v34 = vadd.f32 %v1043_v30, %v908_v0  ;;  %v1377_v30 = vpop.permute.xlu1 %1376  ;;  %v2488_v24 = vld [vmem:[%s3634_s6] sm:$0xff]  ;;  %v1373_v0 = vld [vmem:[%s3631_s3 + $0x8] sm:$0xff] }
 0x17e   :  { %v1146_v59 = vpop.f32.mrf.mxu0  ;;  %v1189_v8 = vpop.f32.mrf.mxu1 }
 0x17f   :  { %v1198_v51 = vadd.f32 %v1146_v59, %v1052_v33  ;;  %v1200_v52 = vadd.f32 %v1189_v8, %v1054_v34 }
 0x180   :  { %v1148_v4 = vpop.f32.mrf.mxu0  ;;  %v1191_v11 = vpop.f32.mrf.mxu1 }
 0x181   :  { %v1199_v18 = vadd.f32 %v1148_v4, %v1053_v35  ;;  %v1201_v49 = vadd.f32 %v1191_v11, %v1055_v40  ;;  %v2478_v4 = vld [vmem:[%s3633_s5] sm:$0xff]  ;;  %v1353_v11 = vld [vmem:[%s3630_s2 + $0x8] sm:$0xff] }
 0x182   :  { %v1150_v43 = vpop.f32.mrf.mxu0  ;;  %v1193_v44 = vpop.f32.mrf.mxu1 }
 0x183   :  { %v1202_v25 = vadd.f32 %v1150_v43, %v1056_v61  ;;  %v1204_v26 = vadd.f32 %v1193_v44, %v1058_v62 }
 0x184   :  { %v1152_v47 = vpop.f32.mrf.mxu0  ;;  %v1195_v48 = vpop.f32.mrf.mxu1 }
 0x185   :  { %v3317_v53 = vadd.f32 %v1152_v47, %v1057_v19  ;;  %v3319_v54 = vadd.f32 %v1195_v48, %v1059_v58 }
 0x186   :  { %v1292_v16 = vpop.f32.mrf.mxu0  ;;  %v1335_v17 = vpop.f32.mrf.mxu1 }
 0x187   :  { %v1344_v50 = vadd.f32 %v1292_v16, %v1198_v51  ;;  %v1346_v29 = vadd.f32 %v1335_v17, %v1200_v52 }
 0x188   :  { %v1294_v55 = vpop.f32.mrf.mxu0  ;;  %v1337_v56 = vpop.f32.mrf.mxu1 }
 0x189   :  { %v1364_v41 = vmul.f32 %v1357_v15, %v1344_v50  ;;  %v1366_v42 = vmul.f32 %v1357_v15, %v1346_v29  ;;  %v1345_v61 = vadd.f32 %v1294_v55, %v1199_v18  ;;  %v1347_v62 = vadd.f32 %v1337_v56, %v1201_v49 }
 0x18a   :  { %v1296_v63 = vpop.f32.mrf.mxu0  ;;  %v1339_v3 = vpop.f32.mrf.mxu1 }
 0x18b   :  { %v1365_v13 = vmul.f32 %v1357_v15, %v1345_v61  ;;  %v1367_v14 = vmul.f32 %v1357_v15, %v1347_v62  ;;  %v1384_v57 = vadd.f32 %v1377_v30, %v1364_v41  ;;  %v1386_v5 = vadd.f32 %v1377_v30, %v1366_v42 }
 0x18c   :  { %v3321_v19 = vadd.f32 %v1296_v63, %v1202_v25  ;;  %v3323_v58 = vadd.f32 %v1339_v3, %v1204_v26 }
 0x18d   :  { %v1385_v7 = vadd.f32 %v1377_v30, %v1365_v13  ;;  %v1387_v1 = vadd.f32 %v1377_v30, %v1367_v14  ;;  %v3325_v59 = vmax.f32 %v1384_v57, 0.0  ;;  %v3329_v2 = vmax.f32 %v1386_v5, 0.0 }
 0x18f   :  { %v3327_v8 = vmax.f32 %v1385_v7, 0.0  ;;  %v3331_v60 = vmax.f32 %v1387_v1, 0.0 }
 0x191   :  { %v2732_v9 = vpack.i.bf16 %v3331_v60, %v3329_v2  ;;  %v2727_v12 = vpack.i.bf16 %v3327_v8, %v3325_v59 }
 0x193   :  { %2733 = vrot.lane.b32.xlu0 %v2732_v9, %s2838_s9  ;;  %2728 = vrot.lane.b32.xlu1 %v2727_v12, %s2838_s9 }
 0x197   :  { %2743 = vrot.lane.b32.xlu0 %v2732_v9, %s2839_s10  ;;  %2738 = vrot.lane.b32.xlu1 %v2727_v12, %s2839_s10 }
 0x19b   :  { %2753 = vrot.lane.b32.xlu0 %v2732_v9, %s2841_s0  ;;  %2748 = vrot.lane.b32.xlu1 %v2727_v12, %s2841_s0 }
 0x19f   :  { %2763 = vrot.lane.b32.xlu0 %v2732_v9, %s2842_s11  ;;  %2758 = vrot.lane.b32.xlu1 %v2727_v12, %s2842_s11 }
 0x1a3   :  { %2773 = vrot.lane.b32.xlu0 %v2732_v9, %s2843_s12  ;;  %2768 = vrot.lane.b32.xlu1 %v2727_v12, %s2843_s12 }
 0x1a7   :  { %2783 = vrot.lane.b32.xlu0 %v2732_v9, %s2844_s13  ;;  %2778 = vrot.lane.b32.xlu1 %v2727_v12, %s2844_s13 }
 0x1ab   :  { %2793 = vrot.lane.b32.xlu0 %v2732_v9, %s2845_s14  ;;  %2788 = vrot.lane.b32.xlu1 %v2727_v12, %s2845_s14 }
 0x1af   :  { %2803 = vrot.lane.b32.xlu0 %v2732_v9, %s2846_s15  ;;  %2798 = vrot.lane.b32.xlu1 %v2727_v12, %s2846_s15  ;;  %v2590_v9 = vld [vmem:[%s3632_s4 + $0x4] sm:$0xf] }
 0x1b3   :  { %2481 = vperm.xlu0 %2725, %v2478_v4   ;;  %1361 = vperm.xlu1 %2726, %v1353_v11  }
 0x1b7   :  { %2491 = vperm.xlu0 %2725, %v2488_v24   ;;  %1381 = vperm.xlu1 %2726, %v1373_v0  }
 0x205   :  { %v2734_v21 = vpop.permute.xlu0 %2733  ;;  %v2729_v22 = vpop.permute.xlu1 %2728 }
 0x206   :  { %v2736_v43 = vunpack.i.h.bf16 %v2734_v21  ;;  %v2735_v44 = vunpack.i.l.bf16 %v2734_v21  ;;  %v2731_v33 = vunpack.i.h.bf16 %v2729_v22  ;;  %v2730_v34 = vunpack.i.l.bf16 %v2729_v22 }
 0x208   :  { %v1425_v25 = vsel %vm3713_vm0, %v2735_v44, %v2736_v43  ;;  %v1426_v26 = vsel %vm3714_vm12, %v2731_v33, %v2735_v44  ;;  %v1427_v35 = vsel %vm3715_vm3, %v2730_v34, %v2731_v33  ;;  %v1428_v40 = vsel %vm3716_vm8, %v2736_v43, %v2730_v34  ;;  %vm3719_vm0 = vmmov %vm3718_vm13 }
 0x209   :  { %v1438_v47 = vpack.c.bf16 %v1425_v25, %v1425_v25  ;;  %v1436_v48 = vpack.c.bf16 %v1427_v35, %v1427_v35  ;;  %v2744_v51 = vpop.permute.xlu0 %2743  ;;  %v2739_v52 = vpop.permute.xlu1 %2738  ;;  %v1429_v15 = vsel %vm2958_vm4, %v1428_v40, 0.0  ;;  %v1431_v16 = vsel %vm3717_vm14, %v1426_v26, 0.0 }
 0x20a   :  { %v2746_v17 = vunpack.i.h.bf16 %v2744_v51  ;;  %v2745_v18 = vunpack.i.l.bf16 %v2744_v51  ;;  %v2741_v49 = vunpack.i.h.bf16 %v2739_v52  ;;  %v2740_v50 = vunpack.i.l.bf16 %v2739_v52 }
 0x20b   :  { %2591 = vmatprep.subr.msk.bf16.mxu0 %vm3718_vm13, %v1436_v48  ;;  %2593 = vmatprep.subr.msk.bf16.mxu1 %vm3719_vm0, %v1438_v47  ;;  %v1435_v29 = vpack.c.bf16 %v1429_v15, %v1429_v15  ;;  %v1437_v30 = vpack.c.bf16 %v1431_v16, %v1431_v16  ;;  %vm3720_vm12 = vcmp.lt.s32.totalorder %v2939_v10, 17  ;;  %vm3724_vm13 = vnez %v3658_v20 }
 0x20c   :  { %v1404_v55 = vsel %vm3720_vm12, %v2745_v18, %v2746_v17  ;;  %vm3721_vm3 = vmmov %vm3720_vm12 }
 0x20d   :  { %v1405_v56 = vsel %vm3721_vm3, %v2741_v49, %v2745_v18  ;;  %vm3722_vm8 = vmmov %vm3721_vm3  ;;  %v1411_v61 = vsel %vm2971_vm7, %v1404_v55, 0.0  ;;  %v2754_v63 = vpop.permute.xlu0 %2753  ;;  %v2749_v3 = vpop.permute.xlu1 %2748  ;;  %v1443_v13 = vsel %vm3719_vm0, %v1435_v29, 0 }
 0x20e   :  { %v1406_v41 = vsel %vm3722_vm8, %v2740_v50, %v2741_v49  ;;  %vm3723_vm2 = vmmov %vm3721_vm3  ;;  %v2756_v57 = vunpack.i.h.bf16 %v2754_v63  ;;  %v2755_v5 = vunpack.i.l.bf16 %v2754_v63  ;;  %v2751_v7 = vunpack.i.h.bf16 %v2749_v3  ;;  %1469 = vmatpush1.bf16.msra.mxu0 %v1443_v13 }
 0x20f   :  { %v1407_v42 = vsel %vm3723_vm2, %v2746_v17, %v2740_v50  ;;  %v1409_v62 = vsel %vm3724_vm13, %v1406_v41, 0.0  ;;  %vm3725_vm12 = vmmov %vm3719_vm0  ;;  %v2750_v1 = vunpack.i.l.bf16 %v2749_v3  ;;  %v1416_v4 = vpack.c.bf16 %v1411_v61, %v1411_v61 }
 0x210   :  { %v1449_v14 = vsel %vm3725_vm12, %v1437_v30, 0  ;;  %v1414_v12 = vpack.c.bf16 %v1409_v62, %v1409_v62  ;;  %vm3726_vm2 = vmand %vm2958_vm4, %vm2962_vm5  ;;  %vm3728_vm8 = vcmp.lt.s32.totalorder %v2939_v10, 15 }
 0x211   :  { %1510 = vmatpush1.bf16.msra.mxu1 %v1449_v14  ;;  %v1408_v11 = vsel %vm3726_vm2, %v1407_v42, 0.0  ;;  %vm3727_vm3 = vmand %vm3717_vm14, %vm2981_vm9  ;;  %v1641_v0 = vsel %vm3728_vm8, %v2755_v5, %v2756_v57  ;;  %vm3732_vm2 = vcmask 64512   ;;  %v2764_v34 = vpop.permute.xlu0 %2763  ;;  %v2759_v25 = vpop.permute.xlu1 %2758 }
 0x212   :  { %v1410_v24 = vsel %vm3727_vm3, %v1405_v56, 0.0  ;;  %vm3729_vm0 = vmmov %vm3728_vm8  ;;  %v1648_v44 = vsel %vm2985_vm10, %v1641_v0, 0.0  ;;  %2592 = vmatmul.mubr.msk.bf16.vlgmr.msra.gmra.mxu0 %vm3732_vm2, %v2590_v9  ;;  %v1413_v26 = vpack.c.bf16 %v1408_v11, %v1408_v11  ;;  %vm3734_vm8 = vcmask 1043456   ;;  %v1412_v56 = vld [vmem:[%s3632_s4] sm:$0xf] }
 0x213   :  { %v1642_v21 = vsel %vm3729_vm0, %v2751_v7, %v2755_v5  ;;  %vm3730_vm12 = vmmov %vm3729_vm0  ;;  %v1415_v35 = vpack.c.bf16 %v1410_v24, %v1410_v24  ;;  %2595 = vmatprep.subr.msk.bf16.mxu0 %vm3734_vm8, %v1414_v12  ;;  %v2766_v40 = vunpack.i.h.bf16 %v2764_v34  ;;  %v2765_v47 = vunpack.i.l.bf16 %v2764_v34  ;;  %1583 = vmatprep.mubr.bf16.mxu0 %v2840_v6 }
 0x214   :  { %v1643_v22 = vsel %vm3730_vm12, %v2750_v1, %v2751_v7  ;;  %vm3731_vm1 = vmmov %vm3729_vm0  ;;  %v2761_v48 = vunpack.i.h.bf16 %v2759_v25  ;;  %v2760_v51 = vunpack.i.l.bf16 %v2759_v25  ;;  %v1654_v17 = vpack.c.bf16 %v1648_v44, %v1648_v44 }
 0x215   :  { %v1644_v43 = vsel %vm3731_vm1, %v2756_v57, %v2750_v1  ;;  %v1646_v33 = vsel %vm2989_vm11, %v1643_v22, 0.0  ;;  %vm3733_vm3 = vmmov %vm3732_vm2  ;;  %vm3738_vm2 = vcmp.lt.s32.totalorder %v2939_v10, 1  ;;  %v2774_v57 = vpop.permute.xlu0 %2773  ;;  %v2769_v5 = vpop.permute.xlu1 %2768  ;;  %v1882_v22 = vpack.c.bf16 %v3327_v8, %v3327_v8 }
 0x216   :  { %2594 = vmatmul.mubr.msk.bf16.vlgmr.msra.gmra.mxu1 %vm3733_vm3, %v2590_v9  ;;  %vm3735_vm0 = vmmov %vm3734_vm8  ;;  %v1652_v16 = vpack.c.bf16 %v1646_v33, %v1646_v33  ;;  %v1764_v18 = vsel %vm3738_vm2, %v2765_v47, %v2766_v40  ;;  %v1765_v62 = vsel %vm3738_vm2, %v2761_v48, %v2765_v47  ;;  %v2599_v9 = vld [vmem:[%s3632_s4 + $0x8] sm:$0xf]  ;;  %v2776_v12 = vunpack.i.h.bf16 %v2774_v57 }
 0x217   :  { %2597 = vmatprep.subr.msk.bf16.mxu1 %vm3735_vm0, %v1416_v4  ;;  %vm3736_vm1 = vmmov %vm3735_vm0  ;;  %1624 = vmatprep.mubr.bf16.mxu1 %v2840_v6  ;;  %v1771_v50 = vsel %vm2971_vm7, %v1764_v18, 0.0  ;;  %v1770_v14 = vsel %vm2981_vm9, %v1765_v62, 0.0  ;;  %v2775_v4 = vunpack.i.l.bf16 %v2774_v57  ;;  %v2771_v11 = vunpack.i.h.bf16 %v2769_v5 }
 0x218   :  { %v1540_v52 = vsel %vm3736_vm1, %v1413_v26, 0  ;;  %vm3737_vm12 = vmmov %vm3735_vm0  ;;  %v1777_v27 = vpack.c.bf16 %v1771_v50, %v1771_v50  ;;  %v1776_v1 = vpack.c.bf16 %v1770_v14, %v1770_v14  ;;  %v2770_v24 = vunpack.i.l.bf16 %v2769_v5 }
 0x219   :  { %v1546_v15 = vsel %vm3737_vm12, %v1415_v35, 0  ;;  %vm3739_vm3 = vmmov %vm3738_vm2  ;;  %1566 = vmatpush1.bf16.msra.mxu0 %v1540_v52  ;;  %v2784_v34 = vpop.permute.xlu0 %2783  ;;  %v2779_v25 = vpop.permute.xlu1 %2778  ;;  %v1881_v8 = vpack.c.bf16 %v3325_v59, %v3325_v59 }
 0x21a   :  { %v1766_v49 = vsel %vm3739_vm3, %v2760_v51, %v2761_v48  ;;  %1607 = vmatpush1.bf16.msra.mxu1 %v1546_v15  ;;  %vm3740_vm8 = vmmov %vm3735_vm0  ;;  %vm3745_vm3 = vcmask 64512   ;;  %v2604_v48 = vld [vmem:[%s3632_s4 + $0xc] sm:$0xf]  ;;  %v2786_v59 = vunpack.i.h.bf16 %v2784_v34  ;;  %v2781_v52 = vunpack.i.h.bf16 %v2779_v25 }
 0x21b   :  { %v1769_v29 = vsel %vm3724_vm13, %v1766_v49, 0.0  ;;  %2600 = vmatprep.subr.msk.bf16.mxu0 %vm3740_vm8, %v1652_v16  ;;  %vm3741_vm0 = vmand %vm2958_vm4, %vm2999_vm15 }
 0x21c   :  { %v1645_v30 = vsel %vm3741_vm0, %v1644_v43, 0.0  ;;  %vm3742_vm1 = vmand %vm3717_vm14, %vm3003_vm6  ;;  %v1775_v61 = vpack.c.bf16 %v1769_v29, %v1769_v29  ;;  %2596 = vmatmul.mubr.msk.bf16.vlgmr.msra.gmra.mxu0 %vm3745_vm3, %v1412_v56  ;;  %v1884_v43 = vpack.c.bf16 %v3331_v60, %v3331_v60  ;;  %v1883_v60 = vpack.c.bf16 %v3329_v2, %v3329_v2 }
 0x21d   :  { %v1647_v55 = vsel %vm3742_vm1, %v1642_v21, 0.0  ;;  %vm3743_vm12 = vmmov %vm3740_vm8  ;;  %v1651_v41 = vpack.c.bf16 %v1645_v30, %v1645_v30  ;;  %1702 = vmatprep.mubr.bf16.mxu0 %v2840_v6  ;;  %v2780_v2 = vunpack.i.l.bf16 %v2779_v25 }
 0x21e   :  { %2602 = vmatprep.subr.msk.bf16.mxu1 %vm3743_vm12, %v1654_v17  ;;  %v1653_v42 = vpack.c.bf16 %v1647_v55, %v1647_v55  ;;  %vm3744_vm4 = vmmov %vm3738_vm2  ;;  %v2794_v55 = vpop.permute.xlu0 %2793 }
 0x21f   :  { %v1767_v32 = vsel %vm3744_vm4, %v2766_v40, %v2760_v51  ;;  %vm3746_vm14 = vmmov %vm3745_vm3  ;;  %v1659_v63 = vsel %vm3740_vm8, %v1651_v41, 0  ;;  %v2785_v51 = vunpack.i.l.bf16 %v2784_v34 }
 0x220   :  { %2598 = vmatmul.mubr.msk.bf16.vlgmr.msra.gmra.mxu1 %vm3746_vm14, %v1412_v56  ;;  %vm3747_vm0 = vmmov %vm3740_vm8  ;;  %1685 = vmatpush1.bf16.msra.mxu0 %v1659_v63  ;;  %v1768_v13 = vsel %vm2962_vm5, %v1767_v32, 0.0  ;;  %vm3754_vm8 = vcmp.lt.s32.totalorder %v2939_v10, 127  ;;  %v2789_v56 = vpop.permute.xlu1 %2788  ;;  %v2609_v63 = vld [vmem:[%s3632_s4 + $0x10] sm:$0xf] }
 0x221   :  { %v1665_v3 = vsel %vm3747_vm0, %v1653_v42, 0  ;;  %vm3748_vm1 = vmmov %vm3747_vm0  ;;  %1743 = vmatprep.mubr.bf16.mxu1 %v2840_v6  ;;  %v1774_v7 = vpack.c.bf16 %v1768_v13, %v1768_v13  ;;  %v1995_v44 = vsel %vm3754_vm8, %v2771_v11, %v2775_v4  ;;  %v2795_v13 = vunpack.i.l.bf16 %v2794_v55 }
 0x222   :  { %1726 = vmatpush1.bf16.msra.mxu1 %v1665_v3  ;;  %2605 = vmatprep.subr.msk.bf16.mxu0 %vm3748_vm1, %v1775_v61  ;;  %vm3749_vm12 = vmmov %vm3747_vm0  ;;  %v1999_v35 = vsel %vm2989_vm11, %v1995_v44, 0.0  ;;  %v2796_v3 = vunpack.i.h.bf16 %v2794_v55  ;;  %v2791_v14 = vunpack.i.h.bf16 %v2789_v56  ;;  %v2790_v57 = vunpack.i.l.bf16 %v2789_v56  ;;  %v3614_v55 = vpop.f32.mrf.mxu0  ;;  %v3616_v56 = vpop.f32.mrf.mxu1 }
 0x223   :  { %2607 = vmatprep.subr.msk.bf16.mxu1 %vm3749_vm12, %v1777_v27  ;;  %vm3750_vm2 = vmmov %vm3745_vm3  ;;  %v2005_v17 = vpack.c.bf16 %v1999_v35, %v1999_v35 }
 0x224   :  { %2601 = vmatmul.mubr.msk.bf16.vlgmr.msra.gmra.mxu0 %vm3750_vm2, %v2599_v9  ;;  %vm3751_vm4 = vmmov %vm3750_vm2 }
 0x225   :  { %vm3752_vm3 = vmmov %vm3747_vm0  ;;  %1825 = vmatprep.mubr.bf16.mxu0 %v2840_v6 }
 0x226   :  { %v1782_v0 = vsel %vm3752_vm3, %v1774_v7, 0  ;;  %vm3753_vm14 = vmmov %vm3747_vm0  ;;  %vm3759_vm3 = vcmask 64512  }
 0x227   :  { %v1788_v21 = vsel %vm3753_vm14, %v1776_v1, 0  ;;  %1808 = vmatpush1.bf16.msra.mxu0 %v1782_v0  ;;  %vm3755_vm0 = vmmov %vm3754_vm8 }
 0x228   :  { %2603 = vmatmul.mubr.msk.bf16.vlgmr.msra.gmra.mxu1 %vm3751_vm4, %v2599_v9  ;;  %v1997_v33 = vsel %vm3755_vm0, %v2776_v12, %v2770_v24  ;;  %2610 = vmatprep.subr.msk.bf16.mxu0 %vm3748_vm1, %v1882_v22  ;;  %vm3756_vm12 = vmmov %vm3748_vm1  ;;  %v2614_v22 = vld [vmem:[%s3632_s4 + $0x14] sm:$0xf] }
 0x229   :  { %1849 = vmatpush1.bf16.msra.mxu1 %v1788_v21  ;;  %1866 = vmatprep.mubr.bf16.mxu1 %v2840_v6  ;;  %vm3757_vm2 = vmmov %vm3755_vm0  ;;  %v2001_v47 = vsel %vm2985_vm10, %v1997_v33, 0.0 }
 0x22a   :  { %2612 = vmatprep.subr.msk.bf16.mxu1 %vm3756_vm12, %v1884_v43  ;;  %v1994_v26 = vsel %vm3757_vm2, %v2775_v4, %v2776_v12  ;;  %vm3758_vm4 = vmmov %vm3755_vm0  ;;  %v2007_v18 = vpack.c.bf16 %v2001_v47, %v2001_v47 }
 0x22b   :  { %v1996_v40 = vsel %vm3758_vm4, %v2770_v24, %v2771_v11  ;;  %vm3760_vm14 = vmmov %vm3759_vm3  ;;  %v2000_v50 = vsel %vm3003_vm6, %v1994_v26, 0.0  ;;  %v2804_v11 = vpop.permute.xlu0 %2803  ;;  %v2799_v24 = vpop.permute.xlu1 %2798 }
 0x22c   :  { %2606 = vmatmul.mubr.msk.bf16.vlgmr.msra.gmra.mxu0 %vm3759_vm3, %v2604_v48  ;;  %vm3761_vm8 = vmmov %vm3748_vm1  ;;  %v1998_v49 = vsel %vm2999_vm15, %v1996_v40, 0.0  ;;  %v2006_v42 = vpack.c.bf16 %v2000_v50, %v2000_v50  ;;  %v2806_v43 = vunpack.i.h.bf16 %v2804_v11  ;;  %v2805_v44 = vunpack.i.l.bf16 %v2804_v11 }
 0x22d   :  { %v1889_v15 = vsel %vm3761_vm8, %v1881_v8, 0  ;;  %vm3762_vm0 = vmmov %vm3748_vm1  ;;  %vm3763_vm1 = vcmp.lt.s32.totalorder %v2939_v10, 113  ;;  %1932 = vmatprep.mubr.bf16.mxu0 %v2840_v6  ;;  %v2004_v41 = vpack.c.bf16 %v1998_v49, %v1998_v49  ;;  %v2801_v33 = vunpack.i.h.bf16 %v2799_v24 }
 0x22e   :  { %v1895_v16 = vsel %vm3762_vm0, %v1883_v60, 0  ;;  %1915 = vmatpush1.bf16.msra.mxu0 %v1889_v15  ;;  %v2118_v29 = vsel %vm3763_vm1, %v2781_v52, %v2785_v51  ;;  %vm3764_vm12 = vmmov %vm3763_vm1  ;;  %v2800_v34 = vunpack.i.l.bf16 %v2799_v24  ;;  %v2619_v15 = vld [vmem:[%s3632_s4 + $0x18] sm:$0xf] }
 0x22f   :  { %v2120_v30 = vsel %vm3764_vm12, %v2786_v59, %v2780_v2  ;;  %vm3765_vm2 = vmmov %vm3762_vm0 }
 0x230   :  { %2608 = vmatmul.mubr.msk.bf16.vlgmr.msra.gmra.mxu1 %vm3760_vm14, %v2604_v48  ;;  %2615 = vmatprep.subr.msk.bf16.mxu0 %vm3765_vm2, %v2005_v17  ;;  %vm3766_vm4 = vmmov %vm3762_vm0  ;;  %vm3768_vm14 = vnez %v3687_v23  ;;  %vm3773_vm2 = vcmask 64512  }
 0x231   :  { %1956 = vmatpush1.bf16.msra.mxu1 %v1895_v16  ;;  %1973 = vmatprep.mubr.bf16.mxu1 %v2840_v6  ;;  %vm3767_vm3 = vmmov %vm3763_vm1  ;;  %v2012_v20 = vsel %vm3766_vm4, %v2004_v41, 0 }
 0x232   :  { %2617 = vmatprep.subr.msk.bf16.mxu1 %vm3766_vm4, %v2007_v18  ;;  %v2117_v61 = vsel %vm3767_vm3, %v2785_v51, %v2786_v59  ;;  %vm3769_vm8 = vmand %vm3768_vm14, %vm3724_vm13 }
 0x233   :  { %v2122_v27 = vsel %vm3769_vm8, %v2118_v29, 0.0  ;;  %vm3770_vm0 = vmmov %vm3763_vm1  ;;  %vm3771_vm1 = vnez %v3689_v36  ;;  %v2123_v9 = vsel %vm2981_vm9, %v2117_v61, 0.0  ;;  %v2624_v29 = vld [vmem:[%s3632_s4 + $0x1c] sm:$0xf] }
 0x234   :  { %v2119_v62 = vsel %vm3770_vm0, %v2780_v2, %v2781_v52  ;;  %vm3772_vm12 = vmand %vm3771_vm1, %vm2971_vm7  ;;  %2611 = vmatmul.mubr.msk.bf16.vlgmr.msra.gmra.mxu0 %vm3773_vm2, %v2609_v63  ;;  %v2128_v7 = vpack.c.bf16 %v2122_v27, %v2122_v27  ;;  %vm3776_vm7 = vcmp.lt.s32.totalorder %v2939_v10, 112  ;;  %v2129_v0 = vpack.c.bf16 %v2123_v9, %v2123_v9 }
 0x235   :  { %v2124_v32 = vsel %vm3772_vm12, %v2120_v30, 0.0  ;;  %vm3774_vm13 = vmmov %vm3773_vm2  ;;  %2038 = vmatpush1.bf16.msra.mxu0 %v2012_v20  ;;  %v2121_v1 = vsel %vm2962_vm5, %v2119_v62, 0.0  ;;  %v2241_v12 = vsel %vm3776_vm7, %v2791_v14, %v2795_v13  ;;  %2055 = vmatprep.mubr.bf16.mxu0 %v2840_v6  ;;  %v2629_v30 = vld [vmem:[%s3632_s4 + $0x20] sm:$0xf]  ;;  %s2847_s4 = smov [#allocation2]  }
 0x236   :  { %vm3775_vm3 = vmmov %vm3766_vm4  ;;  %v2130_v31 = vpack.c.bf16 %v2124_v32, %v2124_v32  ;;  %v2127_v28 = vpack.c.bf16 %v2121_v1, %v2121_v1  ;;  %v2245_v37 = vsel %vm3768_vm14, %v2241_v12, 0.0  ;;  %s2516_s20 = sshll.u32 %s2847_s4, 4  ;;  %s2517_s20 = int_to_ptr.vmem [resolvable:$true] %s2516_s20 }
 0x237   :  { %v2018_v5 = vsel %vm3775_vm3, %v2006_v42, 0  ;;  %vm3777_vm8 = vmmov %vm3776_vm7  ;;  %v2251_v60 = vpack.c.bf16 %v2245_v37, %v2245_v37  ;;  %s2816_s21 = scalar_lea.vmem %s2517_s20, 512  ;;  %p2821_p1 = scmp.lt.s32.totalorder %s2517_s20, %s2517_s20 }
 0x238   :  { %2613 = vmatmul.mubr.msk.bf16.vlgmr.msra.gmra.mxu1 %vm3774_vm13, %v2609_v63  ;;  %v2243_v4 = vsel %vm3777_vm8, %v2796_v3, %v2790_v57  ;;  %vm3778_vm0 = vmmov %vm3775_vm3  ;;  %p2817_p0 = scmp.ne.s32.totalorder %s2517_s20, %s2816_s21  ;;  %p2822_p2 = scmp.lt.s32.totalorder %s2816_s21, %s2816_s21 }
 0x239   :  { %2079 = vmatpush1.bf16.msra.mxu1 %v2018_v5  ;;  %2620 = vmatprep.subr.msk.bf16.mxu0 %vm3778_vm0, %v2128_v7  ;;  %vm3779_vm12 = vmmov %vm3778_vm0  ;;  %v2247_v21 = vsel %vm3771_vm1, %v2243_v4, 0.0 }
 0x23a   :  { %2622 = vmatprep.subr.msk.bf16.mxu1 %vm3779_vm12, %v2130_v31  ;;  %2096 = vmatprep.mubr.bf16.mxu1 %v2840_v6  ;;  %vm3780_vm5 = vmmov %vm3773_vm2  ;;  %v2253_v26 = vpack.c.bf16 %v2247_v21, %v2247_v21  ;;  %p2823_p3 = por %p2822_p2, %p2821_p1 }
 0x23b   :  { %vm3781_vm9 = vmmov %vm3773_vm2 }
 0x23c   :  { %2616 = vmatmul.mubr.msk.bf16.vlgmr.msra.gmra.mxu0 %vm3780_vm5, %v2614_v22  ;;  %vm3782_vm2 = vmmov %vm3778_vm0  ;;  %p2824_p4 = pnand %p2823_p3, %p2817_p0 }
 0x23d   :  { %v2135_v25 = vsel %vm3782_vm2, %v2127_v28, 0  ;;  %vm3783_vm13 = vmmov %vm3778_vm0  ;;  %2178 = vmatprep.mubr.bf16.mxu0 %v2840_v6 }
 0x23e   :  { %v2141_v8 = vsel %vm3783_vm13, %v2129_v0, 0  ;;  %2161 = vmatpush1.bf16.msra.mxu0 %v2135_v25  ;;  %vm3784_vm4 = vmmov %vm3776_vm7  ;;  %vm3786_vm7 = vcmp.lt.s32.totalorder %v2939_v10, 111 }
 0x23f   :  { %v2242_v35 = vsel %vm3784_vm4, %v2790_v57, %v2791_v14  ;;  %vm3785_vm3 = vmmov %vm3784_vm4  ;;  %v2364_v47 = vsel %vm3786_vm7, %v2801_v33, %v2805_v44  ;;  %2625 = vmatprep.subr.msk.bf16.mxu0 %vm3778_vm0, %v2251_v60  ;;  %vm3793_vm4 = vcmask 64512  }
 0x240   :  { %2618 = vmatmul.mubr.msk.bf16.vlgmr.msra.gmra.mxu1 %vm3781_vm9, %v2614_v22  ;;  %v2240_v40 = vsel %vm3785_vm3, %v2795_v13, %v2796_v3  ;;  %vm3787_vm8 = vmmov %vm3786_vm7  ;;  %v2250_v59 = vpack.c.bf16 %v2242_v35, %v2242_v35 }
 0x241   :  { %2202 = vmatpush1.bf16.msra.mxu1 %v2141_v8  ;;  %v2366_v48 = vsel %vm3787_vm8, %v2806_v43, %v2800_v34  ;;  %vm3788_vm12 = vmmov %vm3778_vm0  ;;  %2219 = vmatprep.mubr.bf16.mxu1 %v2840_v6  ;;  %v2252_v51 = vpack.c.bf16 %v2240_v40, %v2240_v40 }
 0x242   :  { %2627 = vmatprep.subr.msk.bf16.mxu1 %vm3788_vm12, %v2253_v26  ;;  %vm3789_vm5 = vmand %vm3768_vm14, %vm2989_vm11 }
 0x243   :  { %v2368_v52 = vsel %vm3789_vm5, %v2364_v47, 0.0  ;;  %vm3790_vm9 = vmand %vm3771_vm1, %vm2985_vm10 }
 0x244   :  { %v2370_v2 = vsel %vm3790_vm9, %v2366_v48, 0.0  ;;  %vm3791_vm2 = vmmov %vm3786_vm7  ;;  %2621 = vmatmul.mubr.msk.bf16.vlgmr.msra.gmra.mxu0 %vm3793_vm4, %v2619_v15  ;;  %v2374_v36 = vpack.c.bf16 %v2368_v52, %v2368_v52 }
 0x245   :  { %v2363_v16 = vsel %vm3791_vm2, %v2805_v44, %v2806_v43  ;;  %vm3792_vm13 = vmmov %vm3791_vm2  ;;  %v2376_v17 = vpack.c.bf16 %v2370_v2, %v2370_v2  ;;  %2301 = vmatprep.mubr.bf16.mxu0 %v2840_v6 }
 0x246   :  { %v2365_v23 = vsel %vm3792_vm13, %v2800_v34, %v2801_v33  ;;  %vm3794_vm11 = vmmov %vm3793_vm4  ;;  %v2369_v49 = vsel %vm3003_vm6, %v2363_v16, 0.0 }
 0x247   :  { %vm3795_vm14 = vmmov %vm3778_vm0  ;;  %v2367_v18 = vsel %vm2999_vm15, %v2365_v23, 0.0  ;;  %v2375_v50 = vpack.c.bf16 %v2369_v49, %v2369_v49 }
 0x248   :  { %2623 = vmatmul.mubr.msk.bf16.vlgmr.msra.gmra.mxu1 %vm3794_vm11, %v2619_v15  ;;  %v2258_v39 = vsel %vm3795_vm14, %v2250_v59, 0  ;;  %vm3796_vm3 = vmmov %vm3778_vm0  ;;  %v2373_v10 = vpack.c.bf16 %v2367_v18, %v2367_v18 }
 0x249   :  { %v2264_v38 = vsel %vm3796_vm3, %v2252_v51, 0  ;;  %2284 = vmatpush1.bf16.msra.mxu0 %v2258_v39  ;;  %vm3797_vm10 = vmmov %vm3778_vm0  ;;  %2342 = vmatprep.mubr.bf16.mxu1 %v2840_v6 }
 0x24a   :  { %2325 = vmatpush1.bf16.msra.mxu1 %v2264_v38  ;;  %2630 = vmatprep.subr.msk.bf16.mxu0 %vm3797_vm10, %v2374_v36  ;;  %vm3798_vm1 = vmmov %vm3778_vm0 }
 0x24b   :  { %2632 = vmatprep.subr.msk.bf16.mxu1 %vm3798_vm1, %v2376_v17  ;;  %vm3799_vm7 = vmmov %vm3793_vm4 }
 0x24c   :  { %2626 = vmatmul.mubr.msk.bf16.vlgmr.msra.gmra.mxu0 %vm3799_vm7, %v2624_v29  ;;  %vm3800_vm15 = vmmov %vm3793_vm4 }
 0x24d   :  { %vm3801_vm8 = vmmov %vm3778_vm0  ;;  %2424 = vmatprep.mubr.bf16.mxu0 %v2840_v6 }
 0x24e   :  { %v2381_v45 = vsel %vm3801_vm8, %v2373_v10, 0  ;;  %vm3802_vm6 = vmmov %vm3778_vm0 }
 0x24f   :  { %v2387_v46 = vsel %vm3802_vm6, %v2375_v50, 0  ;;  %2407 = vmatpush1.bf16.msra.mxu0 %v2381_v45  ;;  %vm3803_vm0 = vmmov %vm3793_vm4 }
 0x250   :  { %2628 = vmatmul.mubr.msk.bf16.vlgmr.msra.gmra.mxu1 %vm3800_vm15, %v2624_v29  ;;  %vm3804_vm12 = vmmov %vm3803_vm0 }
 0x251   :  { %2448 = vmatpush1.bf16.msra.mxu1 %v2387_v46  ;;  %2465 = vmatprep.mubr.bf16.mxu1 %v2840_v6 }
 0x254   :  { %2631 = vmatmul.mubr.msk.bf16.vlgmr.msra.gmra.mxu0 %vm3803_vm0, %v2629_v30 }
 0x258   :  { %2633 = vmatmul.mubr.msk.bf16.vlgmr.msra.gmra.mxu1 %vm3804_vm12, %v2629_v30 }
 0x2d2   :  { %v1488_v41 = vpop.f32.mrf.mxu0 }
 0x2d4   :  { %v1490_v61 = vpop.f32.mrf.mxu0 }
 0x2d6   :  { %v1529_v42 = vpop.f32.mrf.mxu1  ;;  %v1492_v62 = vpop.f32.mrf.mxu0 }
 0x2d8   :  { %v1531_v27 = vpop.f32.mrf.mxu1  ;;  %v1493_v63 = vpop.f32.mrf.mxu0 }
 0x2da   :  { %v1533_v32 = vpop.f32.mrf.mxu1 }
 0x2dc   :  { %v1534_v6 = vpop.f32.mrf.mxu1  ;;  %v1585_v3 = vpop.f32.mrf.mxu0 }
 0x2dd   :  { %v1586_v10 = vadd.f32 %v1585_v3, %v1488_v41  ;;  %v1362_v3 = vpop.permute.xlu1 %1361 }
 0x2de   :  { %v1587_v14 = vpop.f32.mrf.mxu0 }
 0x2df   :  { %v1588_v46 = vadd.f32 %v1587_v14, %v1490_v61 }
 0x2e0   :  { %v1626_v13 = vpop.f32.mrf.mxu1  ;;  %v1589_v20 = vpop.f32.mrf.mxu0 }
 0x2e1   :  { %v1627_v50 = vadd.f32 %v1626_v13, %v1529_v42 }
 0x2e2   :  { %v1628_v57 = vpop.f32.mrf.mxu1  ;;  %v1590_v7 = vpop.f32.mrf.mxu0 }
 0x2e3   :  { %v1629_v30 = vadd.f32 %v1628_v57, %v1531_v27 }
 0x2e4   :  { %v1630_v5 = vpop.f32.mrf.mxu1  ;;  %v1704_v1 = vpop.f32.mrf.mxu0 }
 0x2e5   :  { %v1752_v62 = vadd.f32 %v1704_v1, %v1586_v10 }
 0x2e6   :  { %v1631_v31 = vpop.f32.mrf.mxu1  ;;  %v1706_v12 = vpop.f32.mrf.mxu0 }
 0x2e7   :  { %v1753_v20 = vadd.f32 %v1706_v12, %v1588_v46 }
 0x2e8   :  { %v1745_v9 = vpop.f32.mrf.mxu1  ;;  %v1708_v11 = vpop.f32.mrf.mxu0 }
 0x2e9   :  { %v1754_v32 = vadd.f32 %v1745_v9, %v1627_v50  ;;  %v2482_v9 = vpop.permute.xlu0 %2481 }
 0x2ea   :  { %v1747_v4 = vpop.f32.mrf.mxu1  ;;  %v1709_v28 = vpop.f32.mrf.mxu0 }
 0x2eb   :  { %v1755_v5 = vadd.f32 %v1747_v4, %v1629_v30 }
 0x2ec   :  { %v1749_v24 = vpop.f32.mrf.mxu1  ;;  %v1827_v37 = vpop.f32.mrf.mxu0 }
 0x2ed   :  { %v1875_v7 = vadd.f32 %v1827_v37, %v1752_v62 }
 0x2ee   :  { %v1750_v0 = vpop.f32.mrf.mxu1  ;;  %v1829_v22 = vpop.f32.mrf.mxu0 }
 0x2ef   :  { %v1876_v28 = vadd.f32 %v1829_v22, %v1753_v20 }
 0x2f0   :  { %v1868_v21 = vpop.f32.mrf.mxu1  ;;  %v1831_v44 = vpop.f32.mrf.mxu0 }
 0x2f1   :  { %v1877_v31 = vadd.f32 %v1868_v21, %v1754_v32 }
 0x2f2   :  { %v1870_v43 = vpop.f32.mrf.mxu1  ;;  %v1832_v34 = vpop.f32.mrf.mxu0 }
 0x2f3   :  { %v1878_v0 = vadd.f32 %v1870_v43, %v1755_v5 }
 0x2f4   :  { %v1872_v33 = vpop.f32.mrf.mxu1  ;;  %v1934_v8 = vpop.f32.mrf.mxu0 }
 0x2f5   :  { %v1982_v44 = vadd.f32 %v1934_v8, %v1875_v7 }
 0x2f6   :  { %v1873_v25 = vpop.f32.mrf.mxu1  ;;  %v1936_v26 = vpop.f32.mrf.mxu0 }
 0x2f7   :  { %v1983_v13 = vadd.f32 %v1936_v26, %v1876_v28 }
 0x2f8   :  { %v1975_v60 = vpop.f32.mrf.mxu1  ;;  %v1938_v40 = vpop.f32.mrf.mxu0 }
 0x2f9   :  { %v1984_v33 = vadd.f32 %v1975_v60, %v1877_v31 }
 0x2fa   :  { %v1977_v35 = vpop.f32.mrf.mxu1  ;;  %v1939_v48 = vpop.f32.mrf.mxu0 }
 0x2fb   :  { %v1985_v61 = vadd.f32 %v1977_v35, %v1878_v0  ;;  %v1382_v48 = vpop.permute.xlu1 %1381 }
 0x2fc   :  { %v1979_v47 = vpop.f32.mrf.mxu1  ;;  %v2057_v51 = vpop.f32.mrf.mxu0 }
 0x2fd   :  { %v2105_v27 = vadd.f32 %v2057_v51, %v1982_v44 }
 0x2fe   :  { %v1980_v59 = vpop.f32.mrf.mxu1  ;;  %v2059_v2 = vpop.f32.mrf.mxu0 }
 0x2ff   :  { %v2106_v12 = vadd.f32 %v2059_v2, %v1983_v13  ;;  %v1351_v2 = vadd.f32 %v3616_v56, %v3319_v54 }
 0x300   :  { %v2098_v52 = vpop.f32.mrf.mxu1  ;;  %v2061_v16 = vpop.f32.mrf.mxu0 }
 0x301   :  { %v2107_v14 = vadd.f32 %v2098_v52, %v1984_v33  ;;  %v1349_v52 = vadd.f32 %v3614_v55, %v3317_v53  ;;  %v1368_v16 = vmul.f32 %v1362_v3, %v3321_v19  ;;  %v1371_v10 = vmul.f32 %v1362_v3, %v1351_v2 }
 0x302   :  { %v2100_v15 = vpop.f32.mrf.mxu1  ;;  %v2062_v39 = vpop.f32.mrf.mxu0 }
 0x303   :  { %v2108_v4 = vadd.f32 %v2100_v15, %v1985_v61  ;;  %v1370_v15 = vmul.f32 %v1362_v3, %v3323_v58  ;;  %v1369_v50 = vmul.f32 %v1362_v3, %v1349_v52  ;;  %v1391_v62 = vadd.f32 %v1382_v48, %v1371_v10 }
 0x304   :  { %v2102_v23 = vpop.f32.mrf.mxu1  ;;  %v2180_v36 = vpop.f32.mrf.mxu0 }
 0x305   :  { %v2228_v37 = vadd.f32 %v2180_v36, %v2105_v27  ;;  %v1389_v58 = vadd.f32 %v1382_v48, %v1369_v50 }
 0x306   :  { %v2103_v38 = vpop.f32.mrf.mxu1  ;;  %v2182_v18 = vpop.f32.mrf.mxu0 }
 0x307   :  { %v2229_v22 = vadd.f32 %v2182_v18, %v2106_v12  ;;  %v2492_v38 = vpop.permute.xlu0 %2491 }
 0x308   :  { %v2221_v17 = vpop.f32.mrf.mxu1  ;;  %v2184_v29 = vpop.f32.mrf.mxu0 }
 0x309   :  { %v2230_v21 = vadd.f32 %v2221_v17, %v2107_v14  ;;  %v1388_v29 = vadd.f32 %v1382_v48, %v1368_v16 }
 0x30a   :  { %v2223_v49 = vpop.f32.mrf.mxu1  ;;  %v2185_v63 = vpop.f32.mrf.mxu0 }
 0x30b   :  { %v2231_v43 = vadd.f32 %v2223_v49, %v2108_v4 }
 0x30c   :  { %v2225_v45 = vpop.f32.mrf.mxu1  ;;  %v2303_v11 = vpop.f32.mrf.mxu0 }
 0x30d   :  { %v2351_v8 = vadd.f32 %v2303_v11, %v2228_v37  ;;  %v1390_v45 = vadd.f32 %v1382_v48, %v1370_v15 }
 0x30e   :  { %v2226_v6 = vpop.f32.mrf.mxu1  ;;  %v2305_v41 = vpop.f32.mrf.mxu0 }
 0x30f   :  { %v2352_v26 = vadd.f32 %v2305_v41, %v2229_v22 }
 0x310   :  { %v2344_v24 = vpop.f32.mrf.mxu1  ;;  %v2307_v57 = vpop.f32.mrf.mxu0 }
 0x311   :  { %v2353_v60 = vadd.f32 %v2344_v24, %v2230_v21 }
 0x312   :  { %v2346_v42 = vpop.f32.mrf.mxu1  ;;  %v2308_v34 = vpop.f32.mrf.mxu0 }
 0x313   :  { %v2354_v35 = vadd.f32 %v2346_v42, %v2231_v43 }
 0x314   :  { %v2348_v1 = vpop.f32.mrf.mxu1  ;;  %v2426_v40 = vpop.f32.mrf.mxu0 }
 0x315   :  { %v2474_v59 = vadd.f32 %v2426_v40, %v2351_v8 }
 0x316   :  { %v2349_v25 = vpop.f32.mrf.mxu1  ;;  %v2428_v23 = vpop.f32.mrf.mxu0 }
 0x317   :  { %v2484_v36 = vmul.f32 %v2482_v9, %v2474_v59  ;;  %v2475_v18 = vadd.f32 %v2428_v23, %v2352_v26 }
 0x318   :  { %v2467_v47 = vpop.f32.mrf.mxu1  ;;  %v2430_v46 = vpop.f32.mrf.mxu0 }
 0x319   :  { %v2476_v51 = vadd.f32 %v2467_v47, %v2353_v60  ;;  %v2494_v55 = vadd.f32 %v2492_v38, %v2484_v36  ;;  %v2485_v54 = vmul.f32 %v2482_v9, %v2475_v18 }
 0x31a   :  { %v2469_v39 = vpop.f32.mrf.mxu1  ;;  %v2431_v19 = vpop.f32.mrf.mxu0 }
 0x31b   :  { %v2486_v17 = vmul.f32 %v2482_v9, %v2476_v51  ;;  %v2477_v49 = vadd.f32 %v2469_v39, %v2354_v35  ;;  %v2498_v63 = vadd.f32 %v2494_v55, %v1388_v29  ;;  %v2495_v20 = vadd.f32 %v2492_v38, %v2485_v54 }
 0x31c   :  { %v2471_v53 = vpop.f32.mrf.mxu1 }
 0x31d   :  { %v2496_v30 = vadd.f32 %v2492_v38, %v2486_v17  ;;  %v2487_v56 = vmul.f32 %v2482_v9, %v2477_v49  ;;  %v2502_v7 = vmax.f32 %v2498_v63, 0.0  ;;  %v2499_v11 = vadd.f32 %v2495_v20, %v1389_v58 }
 0x31e   :  { %v2472_v32 = vpop.f32.mrf.mxu1 }
 0x31f   :  { %v2500_v6 = vadd.f32 %v2496_v30, %v1390_v45  ;;  %v2497_v5 = vadd.f32 %v2492_v38, %v2487_v56  ;;  %2506 = vst [vmem:[#allocation2] sm:$0xff] %v2502_v7  ;;  %v2503_v28 = vmax.f32 %v2499_v11, 0.0 }
 0x321   :  { %v2504_v31 = vmax.f32 %v2500_v6, 0.0  ;;  %v2501_v24 = vadd.f32 %v2497_v5, %v1391_v62  ;;  %2507 = vst [vmem:[#allocation2 + $0x8] sm:$0xff] %v2503_v28 }
 0x323   :  { %2509 = vst [vmem:[#allocation2 + $0x10] sm:$0xff] %v2504_v31  ;;  %v2505_v0 = vmax.f32 %v2501_v24, 0.0 }
 0x325   :  { %2510 = vst [vmem:[#allocation2 + $0x18] sm:$0xff] %v2505_v0 }
 0x326   :  { %2827 = shalt.err (!%p2824_p4)
}
 0x327   :  { %s2848_s1 = smov 256  }
 0x328   :  { %2522 = dma.vmem_to_hbm [thread:$0]  %s2517_s20, 512, %s3635_s7, [#allocation3], %s2848_s1, %s2848_s1, %s2838_s9  }
 0x329   :  { %2836 = dma.done.wait [#allocation3], 512  }
 0x32a   :  { %2837 = vsyncadd [#allocation3], 4294966784 }
 0x32b   :  { %2526 = vsyncpa [#allocation3], 1 }

</bundles_post_ra>
